<compile_context>
chip_gen: v5e
topology: v5e:2x2
jax: 0.10.0
libtpu: 0.0.40
codegen_flags: <defaults>
</compile_context>

<pallas_src>
import functools

import jax
import jax.numpy as jnp
from jax.experimental import pallas as pl
from jax.experimental.pallas import tpu as pltpu


_COMPUTE_DTYPE = jnp.bfloat16          # matmul operands only; acc/epilogue stay f32
_VMEM_BUDGET = 14 * 1024 * 1024        # conservative per-call tile budget (all gens)
_VMEM_LIMIT = 32 * 1024 * 1024         # explicit scoped limit (<= physical everywhere)


# ----------------------------------------------------------------------------
# Pallas kernels
# ----------------------------------------------------------------------------
def _make_conv_kernel(act, has_add):
    """o = act(W @ patches [+ add]); BN scale/bias are pre-folded into W."""

    def _act(y):
        if act == "relu":
            return jnp.maximum(y, 0.0)
        return y

    if has_add:
        def kernel(p_ref, w_ref, a_ref, o_ref):
            y = jnp.dot(w_ref[...], p_ref[...], preferred_element_type=jnp.float32)
            o_ref[...] = _act(y + a_ref[...])
    else:
        def kernel(p_ref, w_ref, o_ref):
            y = jnp.dot(w_ref[...], p_ref[...], preferred_element_type=jnp.float32)
            o_ref[...] = _act(y)
    return kernel


def _saf_kernel(p_ref, w_ref, pb_ref, s1_ref, b1_ref, fused_ref, bn1_ref):
    """SpatialAttentionFusion + bn1 in one pass:
       fused   = pb * sigmoid(conv3x3(cat) + bias)
       bn1_out = s1 * fused + b1                       (two lane-dense outputs)."""
    y = jnp.dot(w_ref[...], p_ref[...], preferred_element_type=jnp.float32)
    fused = jax.nn.sigmoid(y) * pb_ref[...]
    fused_ref[...] = fused
    bn1_ref[...] = fused * s1_ref[...] + b1_ref[...]


def _fft_trio_kernel(p_ref, w_ref, o_ref):
    """Accumulate relu(W_k @ patches_k) over the 3 Fourier branches (grid axis 1),
    i.e. the three convs AND both branch adds of the FFT block in one call."""
    y = jnp.maximum(
        jnp.dot(w_ref[...], p_ref[...], preferred_element_type=jnp.float32), 0.0)

    @pl.when(pl.program_id(1) == 0)
    def _():
        o_ref[...] = y

    @pl.when(pl.program_id(1) != 0)
    def _():
        o_ref[...] = o_ref[...] + y


# ----------------------------------------------------------------------------
# Tiling / layout helpers
# ----------------------------------------------------------------------------
@functools.lru_cache(maxsize=None)
def _is_dual_tensorcore():
    try:
        kind = jax.devices()[0].device_kind.lower()
        return ("v7" in kind) or ("7x" in kind)
    except Exception:  # pragma: no cover - conservative fallback
        return False


def _choose_tp(P, k_rows, cout, n_maps, in_bytes=2):
    """Largest lane-dense (multiple-of-128) pixel tile that divides P, fits the
    VMEM budget (double-buffered), and — on dual-TensorCore chips — leaves at
    least two grid steps so the 'parallel' axis spans both cores."""
    per_col = 2 * (k_rows * in_bytes + n_maps * cout * 4)   # double-buffered bytes/col
    cap = max(128, (_VMEM_BUDGET // max(per_col, 1)) // 128 * 128)
    if P % 128 != 0 or P <= 128:
        return P                                            # full extent is always legal
    divisors = [t for t in range(128, P + 1, 128) if P % t == 0]
    fit = [t for t in divisors if t <= cap] or [128]
    if _is_dual_tensorcore():
        half = [t for t in fit if t <= P // 2]
        if half:
            return max(half)
    return max(fit)


def _compiler_params(n_grid_axes, last_arbitrary=False):
    sem = ["parallel"] * n_grid_axes
    if last_arbitrary:
        sem[-1] = "arbitrary"
    return pltpu.CompilerParams(dimension_semantics=tuple(sem),
                                vmem_limit_bytes=_VMEM_LIMIT)


def _im2col(x, k, dilation, padding):
    """x: (C, N, H, W) -> patches (C*k*k, N*H*W) for a same-size dilated conv."""
    C, N, H, W = x.shape
    xp = jnp.pad(x, ((0, 0), (0, 0), (padding, padding), (padding, padding)))
    cols = []
    for ky in range(k):
        for kx in range(k):
            y0, x0 = ky * dilation, kx * dilation
            cols.append(xp[:, :, y0:y0 + H, x0:x0 + W])
    # TODO(synk): for production feature-map sizes move im2col in-kernel (DMA the
    # halo tile once, 9 shifted dots) to avoid the 9x HBM expansion done by XLA.
    return jnp.stack(cols, axis=1).reshape(C * k * k, N * H * W)


def _patches(x, ksize, dilation=1, padding=0):
    """im2col (+ trailing ones-row carrying the folded bias) in compute dtype."""
    C, N, H, W = x.shape
    P = N * H * W
    p = x.reshape(C, P) if ksize == 1 else _im2col(x, ksize, dilation, padding)
    ones = jnp.ones((1, P), p.dtype)
    return jnp.concatenate([p, ones], axis=0).astype(_COMPUTE_DTYPE)


def _fold_weight(w, scale=None, shift=None):
    """(Cout, ...) -> (Cout, K+1): per-output-channel BN scale folded into the
    rows, shift appended as the bias column matched to the patches' ones-row."""
    cout = w.shape[0]
    w2d = w.reshape(cout, -1).astype(jnp.float32)
    if scale is not None:
        w2d = w2d * scale.reshape(cout, 1)
    if shift is None:
        shift = jnp.zeros((cout,), jnp.float32)
    return jnp.concatenate(
        [w2d, shift.reshape(cout, 1).astype(jnp.float32)], axis=1
    ).astype(_COMPUTE_DTYPE)


# ----------------------------------------------------------------------------
# pallas_call wrappers
# ----------------------------------------------------------------------------
def conv_mm(patches, w_fold, spatial, *, act="none", add=None):
    """One MXU matmul over all pixels: out = act(w_fold @ patches [+ add])."""
    Kp, P = patches.shape
    Cout = w_fold.shape[0]
    n_maps = 1 + (1 if add is not None else 0)
    TP = _choose_tp(P, Kp, Cout, n_maps)
    grid = (P // TP,)

    operands = [patches, w_fold]
    in_specs = [pl.BlockSpec((Kp, TP), lambda j: (0, j)),
                pl.BlockSpec((Cout, Kp), lambda j: (0, 0))]
    if add is not None:
        operands.append(add.reshape(Cout, P).astype(jnp.float32))
        in_specs.append(pl.BlockSpec((Cout, TP), lambda j: (0, j)))

    out = pl.pallas_call(
        _make_conv_kernel(act, add is not None),
        out_shape=jax.ShapeDtypeStruct((Cout, P), jnp.float32),
        grid=grid,
        in_specs=in_specs,
        out_specs=pl.BlockSpec((Cout, TP), lambda j: (0, j)),
        compiler_params=_compiler_params(1),
    )(*operands)
    return out.reshape((Cout,) + spatial)


def saf_bn1(cat_c, w_fold, pb_c, s1, b1):
    """SpatialAttentionFusion conv + sigmoid gating + bn1 — one call, two outputs."""
    _, N, H, W = cat_c.shape
    P = N * H * W
    patches = _patches(cat_c, 3, 1, 1)
    Kp = patches.shape[0]
    C = w_fold.shape[0]
    TP = _choose_tp(P, Kp, C, 3)            # pb in + two outputs
    grid = (P // TP,)

    fused, bn1_out = pl.pallas_call(
        _saf_kernel,
        out_shape=(jax.ShapeDtypeStruct((C, P), jnp.float32),
                   jax.ShapeDtypeStruct((C, P), jnp.float32)),
        grid=grid,
        in_specs=[pl.BlockSpec((Kp, TP), lambda j: (0, j)),
                  pl.BlockSpec((C, Kp), lambda j: (0, 0)),
                  pl.BlockSpec((C, TP), lambda j: (0, j)),
                  pl.BlockSpec((C, 1), lambda j: (0, 0)),
                  pl.BlockSpec((C, 1), lambda j: (0, 0))],
        out_specs=(pl.BlockSpec((C, TP), lambda j: (0, j)),
                   pl.BlockSpec((C, TP), lambda j: (0, j))),
        compiler_params=_compiler_params(1),
    )(patches, w_fold,
      pb_c.reshape(C, P).astype(jnp.float32),
      s1.reshape(C, 1).astype(jnp.float32),
      b1.reshape(C, 1).astype(jnp.float32))
    shp = (C, N, H, W)
    return fused.reshape(shp), bn1_out.reshape(shp)


def fft_trio(patch_stack, w_stack, spatial):
    """sum_k relu(W_k @ patches_k) for the three Fourier-branch convs — one call."""
    B, Kp, P = patch_stack.shape
    C = w_stack.shape[1]
    TP = _choose_tp(P, Kp, C, 1)
    grid = (P // TP, B)                      # branch (reduction) axis last

    out = pl.pallas_call(
        _fft_trio_kernel,
        out_shape=jax.ShapeDtypeStruct((C, P), jnp.float32),
        grid=grid,
        in_specs=[pl.BlockSpec((None, Kp, TP), lambda j, k: (k, 0, j)),
                  pl.BlockSpec((None, C, Kp), lambda j, k: (k, 0, 0))],
        out_specs=pl.BlockSpec((C, TP), lambda j, k: (0, j)),
        compiler_params=_compiler_params(2, last_arbitrary=True),
    )(patch_stack, w_stack)
    return out.reshape((C,) + spatial)


# ----------------------------------------------------------------------------
# Non-Pallas pieces (spectral / padding plumbing)
# ----------------------------------------------------------------------------
def fft_split(x, sigma):
    """High/low-frequency split of TripleKernelFourierConvolution (last 2 dims)."""
    # TODO(synk): FFT has no Pallas TPU equivalent; runs as jnp.fft here.
    H, W = x.shape[-2], x.shape[-1]
    Hp = 1 << (H - 1).bit_length()
    Wp = 1 << (W - 1).bit_length()
    pad = [(0, 0)] * (x.ndim - 2) + [(0, Hp - H), (0, Wp - W)]
    xp = jnp.pad(x, pad)
    f = jnp.fft.fftshift(jnp.fft.fft2(xp, axes=(-2, -1)), axes=(-2, -1))
    yy, xx = jnp.meshgrid(jnp.linspace(-1.0, 1.0, Hp),
                          jnp.linspace(-1.0, 1.0, Wp), indexing="ij")
    g = jnp.exp(-(xx * xx + yy * yy) / (2.0 * sigma * sigma)).astype(jnp.float32)

    def back(fk):
        img = jnp.fft.ifft2(jnp.fft.ifftshift(fk, axes=(-2, -1)), axes=(-2, -1))
        return jnp.real(img)[..., :H, :W].astype(jnp.float32)

    return back(f * (1.0 - g)), back(f * g)        # (high, low)


def bn_affine(bn, eps=1e-5):
    g, b, m, v = bn
    s = g / jnp.sqrt(v + eps)
    return s, b - m * s


# ----------------------------------------------------------------------------
# UpperModule forward (Pallas path)
# ----------------------------------------------------------------------------
def upper_module_forward(p, border, global_feat):
    C = border.shape[1]
    N, _, GH, GW = global_feat.shape
    P = N * GH * GW
    spatial = (N, GH, GW)
    ph = (GH - border.shape[2]) // 2
    pw = (GW - border.shape[3]) // 2
    pb = jnp.pad(border, ((0, 0), (0, 0), (ph, ph), (pw, pw)), mode="reflect")

    # channel-major layout: (C, N, H, W) -> (C, N*H*W) is a free, lane-dense view
    pb_c = jnp.transpose(pb, (1, 0, 2, 3)).astype(jnp.float32)
    gl_c = jnp.transpose(global_feat, (1, 0, 2, 3)).astype(jnp.float32)
    cat_c = jnp.concatenate([pb_c, gl_c], axis=0)

    # ---- 1) SpatialAttentionFusion + bn1 (one call, two outputs) --------------
    s1, b1 = bn_affine(p["bn1"])
    fused, bn1_out = saf_bn1(cat_c, _fold_weight(p["saf_w"], shift=p["saf_b"]),
                             pb_c, s1, b1)

    # ---- 2-4) DilatedConvBlock(bn1_out) ----------------------------------------
    s, b = bn_affine(p["dcb_bn1"])
    a = conv_mm(_patches(bn1_out, 3, 2, 2),
                _fold_weight(p["dcb_conv1"], s, b), spatial, act="relu")
    # dconv1 (+) conv1x1 merged into ONE matmul, bn2 folded into the rows/bias.
    s, b = bn_affine(p["dcb_bn2"])
    merged_patches = jnp.concatenate(
        [_im2col(a, 3, 2, 2), a.reshape(C, P), jnp.ones((1, P), jnp.float32)],
        axis=0).astype(_COMPUTE_DTYPE)
    merged_w = jnp.concatenate(
        [p["dcb_dconv1"].reshape(C, -1), p["dcb_conv1x1"].reshape(C, -1)], axis=1)
    comb = conv_mm(merged_patches, _fold_weight(merged_w, s, b), spatial)
    dilated_out = conv_mm(_patches(comb, 3, 3, 3),
                          _fold_weight(p["dcb_dconv2"]), spatial, act="relu")

    # ---- 5) TripleKernelFourierConvolution(fused): 3 convs + 2 adds, ONE call --
    hi_img, lo_img = fft_split(fused, sigma=10.0)
    patch_stack = jnp.stack([_patches(hi_img, 3, 1, 1),
                             _patches(lo_img, 3, 2, 2),
                             _patches(fused, 3, 2, 2)], axis=0)
    w_stack = jnp.stack(
        [_fold_weight(p["fft_hf_w"], *bn_affine(p["fft_hf_bn"])),
         _fold_weight(p["fft_lf_w"], *bn_affine(p["fft_lf_bn"])),
         _fold_weight(p["fft_g_w"], *bn_affine(p["fft_g_bn"]))], axis=0)
    fft_out = fft_trio(patch_stack, w_stack, spatial)

    # ---- 6-8) ResidualBlock(fused): residual add + relu fused into last conv ---
    s, b = bn_affine(p["res_bn1"])
    identity = conv_mm(_patches(fused, 1),
                       _fold_weight(p["res_conv1x1"], s, b), spatial)
    s, b = bn_affine(p["res_bn2"])
    r = conv_mm(_patches(identity, 3, 2, 2),
                _fold_weight(p["res_conv1"], s, b), spatial, act="relu")
    s, b = bn_affine(p["res_bn3"])
    residual_out = conv_mm(_patches(r, 3, 2, 2),
                           _fold_weight(p["res_conv2"], s, b), spatial,
                           act="relu", add=fused)

    # ---- 9) final 1x1 conv: bn2/bn3 branch affines + final_bn folded into W ----
    # (1x1, no padding -> exact fold; per-channel shifts become a per-output bias)
    s2, b2 = bn_affine(p["bn2"])
    s3, b3 = bn_affine(p["bn3"])
    s_res, b_res = s2 * s3[:C], b2 * s3[:C] + b3[:C]
    s_dil, b_dil = s3[C:], b3[C:]
    sf, bf = bn_affine(p["final_bn"])
    fw = p["final_w"].reshape(C, 4 * C).astype(jnp.float32)
    fw_fold = jnp.concatenate([fw[:, :C], fw[:, C:2 * C],
                               fw[:, 2 * C:3 * C] * s_res[None, :],
                               fw[:, 3 * C:] * s_dil[None, :]], axis=1)
    bias = fw[:, 2 * C:3 * C] @ b_res + fw[:, 3 * C:] @ b_dil
    w_final = _fold_weight(fw_fold, sf, sf * bias + bf)

    final_in = jnp.concatenate(
        [bn1_out.reshape(C, P), fft_out.reshape(C, P),
         residual_out.reshape(C, P), dilated_out.reshape(C, P),
         jnp.ones((1, P), jnp.float32)], axis=0).astype(_COMPUTE_DTYPE)
    out_c = conv_mm(final_in, w_final, spatial)
    return jnp.transpose(out_c, (1, 0, 2, 3))       # back to NCHW


# ----------------------------------------------------------------------------
# Pure-JAX reference (mirrors the PyTorch forward, inference-mode BN)
# ----------------------------------------------------------------------------
def _conv_ref(x, w, dilation, padding, bias=None):
    y = jax.lax.conv_general_dilated(
        x, w, window_strides=(1, 1),
        padding=((padding, padding), (padding, padding)),
        rhs_dilation=(dilation, dilation),
        dimension_numbers=("NCHW", "OIHW", "NCHW"),
        precision=jax.lax.Precision.HIGHEST)
    if bias is not None:
        y = y + bias.reshape(1, -1, 1, 1)
    return y


def _bn_ref(x, bn, eps=1e-5):
    g, b, m, v = (t.reshape(1, -1, 1, 1) for t in bn)
    return (x - m) / jnp.sqrt(v + eps) * g + b


def upper_module_ref(p, border, global_feat):
    ph = (global_feat.shape[2] - border.shape[2]) // 2
    pw = (global_feat.shape[3] - border.shape[3]) // 2
    pb = jnp.pad(border, ((0, 0), (0, 0), (ph, ph), (pw, pw)), mode="reflect")
    x = jnp.concatenate([pb, global_feat], axis=1)
    fused = pb * jax.nn.sigmoid(_conv_ref(x, p["saf_w"], 1, 1, bias=p["saf_b"]))
    bn1_out = _bn_ref(fused, p["bn1"])
    # DilatedConvBlock
    a = jnp.maximum(_bn_ref(_conv_ref(bn1_out, p["dcb_conv1"], 2, 2), p["dcb_bn1"]), 0.0)
    comb = _bn_ref(_conv_ref(a, p["dcb_dconv1"], 2, 2) + _conv_ref(a, p["dcb_conv1x1"], 1, 0),
                   p["dcb_bn2"])
    dilated_out = jnp.maximum(_conv_ref(comb, p["dcb_dconv2"], 3, 3), 0.0)
    # TripleKernelFourierConvolution
    hi, lo = fft_split(fused, 10.0)
    hi_out = jnp.maximum(_bn_ref(_conv_ref(hi, p["fft_hf_w"], 1, 1), p["fft_hf_bn"]), 0.0)
    lo_out = jnp.maximum(_bn_ref(_conv_ref(lo, p["fft_lf_w"], 2, 2), p["fft_lf_bn"]), 0.0)
    gl_out = jnp.maximum(_bn_ref(_conv_ref(fused, p["fft_g_w"], 2, 2), p["fft_g_bn"]), 0.0)
    fft_out = hi_out + (lo_out + gl_out)
    # ResidualBlock
    identity = _bn_ref(_conv_ref(fused, p["res_conv1x1"], 1, 0), p["res_bn1"])
    r = jnp.maximum(_bn_ref(_conv_ref(identity, p["res_conv1"], 2, 2), p["res_bn2"]), 0.0)
    r = _bn_ref(_conv_ref(r, p["res_conv2"], 2, 2), p["res_bn3"])
    residual_out = jnp.maximum(r + fused, 0.0)
    residual_bn_out = _bn_ref(residual_out, p["bn2"])
    combined_1 = jnp.concatenate([bn1_out, fft_out], axis=1)
    combined_2 = _bn_ref(jnp.concatenate([residual_bn_out, dilated_out], axis=1), p["bn3"])
    final_combined = jnp.concatenate([combined_1, combined_2], axis=1)
    return _bn_ref(_conv_ref(final_combined, p["final_w"], 1, 0), p["final_bn"])


# ----------------------------------------------------------------------------
# Parameter init + main
# ----------------------------------------------------------------------------
def init_params(key, C):
    keys = iter(list(jax.random.split(key, 128)))

    def conv_w(cout, cin, k):
        return jax.random.normal(next(keys), (cout, cin, k, k), jnp.float32) / jnp.sqrt(cin * k * k)

    def bn(c):
        g = 1.0 + 0.1 * jax.random.normal(next(keys), (c,), jnp.float32)
        b = 0.1 * jax.random.normal(next(keys), (c,), jnp.float32)
        m = 0.1 * jax.random.normal(next(keys), (c,), jnp.float32)
        v = 0.5 + jnp.abs(jax.random.normal(next(keys), (c,), jnp.float32))
        return (g, b, m, v)

    p = {}
    p["saf_w"] = conv_w(C, 2 * C, 3)
    p["saf_b"] = 0.1 * jax.random.normal(next(keys), (C,), jnp.float32)
    p["bn1"] = bn(C)
    p["res_conv1x1"] = conv_w(C, C, 1); p["res_bn1"] = bn(C)
    p["res_conv1"] = conv_w(C, C, 3);   p["res_bn2"] = bn(C)
    p["res_conv2"] = conv_w(C, C, 3);   p["res_bn3"] = bn(C)
    p["bn2"] = bn(C)
    p["dcb_conv1"] = conv_w(C, C, 3);   p["dcb_bn1"] = bn(C)
    p["dcb_dconv1"] = conv_w(C, C, 3)
    p["dcb_conv1x1"] = conv_w(C, C, 1); p["dcb_bn2"] = bn(C)
    p["dcb_dconv2"] = conv_w(C, C, 3)
    p["fft_hf_w"] = conv_w(C, C, 3);    p["fft_hf_bn"] = bn(C)
    p["fft_lf_w"] = conv_w(C, C, 3);    p["fft_lf_bn"] = bn(C)
    p["fft_g_w"] = conv_w(C, C, 3);     p["fft_g_bn"] = bn(C)
    p["bn3"] = bn(2 * C)
    p["final_w"] = conv_w(C, 4 * C, 1)
    p["final_bn"] = bn(C)
    return p


if __name__ == "__main__":
    # UpperModule's wiring requires in_channels == out_channels.
    C = 8
    N, GH, GW = 2, 16, 16      # global_feature spatial; pixels = 2*16*16 = 512 (lane-dense)
    BH, BW = 12, 12            # border_feature (reflect-padded up to 16x16)

    key = jax.random.PRNGKey(0)
    kp, kb, kg = jax.random.split(key, 3)
    params = init_params(kp, C)
    border = jax.random.normal(kb, (N, C, BH, BW), jnp.float32)
    global_feat = jax.random.normal(kg, (N, C, GH, GW), jnp.float32)

    fwd = jax.jit(upper_module_forward)
    out = jax.block_until_ready(fwd(params, border, global_feat))

    ref = upper_module_ref(params, border, global_feat)
    assert out.shape == (N, C, GH, GW), out.shape
    rel_err = float(jnp.max(jnp.abs(out - ref)) / (jnp.max(jnp.abs(ref)) + 1e-6))
    assert rel_err < 3e-2, f"relative error too large: {rel_err}"

    print("KERNEL_OK")
</pallas_src>

<mosaic_0001>
module attributes {stable_mosaic.version = 11 : i64} {
  func.func @_saf_kernel(%arg0: i32, %arg1: memref<145x512xbf16, #tpu.memory_space<vmem>>, %arg2: memref<8x145xbf16, #tpu.memory_space<vmem>>, %arg3: memref<8x512xf32, #tpu.memory_space<vmem>>, %arg4: memref<8x1xf32, #tpu.memory_space<vmem>>, %arg5: memref<8x1xf32, #tpu.memory_space<vmem>>, %arg6: memref<8x512xf32, #tpu.memory_space<vmem>>, %arg7: memref<8x512xf32, #tpu.memory_space<vmem>>) attributes {dimension_semantics = [#tpu.dimension_semantics<parallel>], iteration_bounds = array<i64: 1>, scalar_prefetch = 0 : i64, scratch_operands = 0 : i64, tpu.core_type = #tpu.core_type<tc>, window_params = [{transform_indices = @transform_0, window_bounds = array<i64: 145, 512>}, {pipeline_mode = #tpu.pipeline_mode<synchronous>, transform_indices = @transform_1, window_bounds = array<i64: 8, 145>}, {transform_indices = @transform_2, window_bounds = array<i64: 8, 512>}, {pipeline_mode = #tpu.pipeline_mode<synchronous>, transform_indices = @transform_3, window_bounds = array<i64: 8, 1>}, {pipeline_mode = #tpu.pipeline_mode<synchronous>, transform_indices = @transform_4, window_bounds = array<i64: 8, 1>}, {transform_indices = @transform_5, window_bounds = array<i64: 8, 512>}, {transform_indices = @transform_6, window_bounds = array<i64: 8, 512>}]} {
    %c0 = arith.constant 0 : index
    %c0_0 = arith.constant 0 : index
    %0 = vector.load %arg2[%c0, %c0_0] : memref<8x145xbf16, #tpu.memory_space<vmem>>, vector<8x145xbf16>
    %c0_1 = arith.constant 0 : index
    %c0_2 = arith.constant 0 : index
    %1 = vector.load %arg1[%c0_1, %c0_2] : memref<145x512xbf16, #tpu.memory_space<vmem>>, vector<145x512xbf16>
    %cst = arith.constant dense<0.000000e+00> : vector<8x512xf32>
    %2 = tpu.matmul %0, %1, %cst {dimension_numbers = #tpu.dot_dimension_numbers<[1], [0], [0], [1], [0, 0, 1, 1], [], []>} : vector<8x145xbf16>, vector<145x512xbf16>, vector<8x512xf32> -> vector<8x512xf32>
    %3 = arith.negf %2 : vector<8x512xf32>
    %4 = math.exp %3 : vector<8x512xf32>
    %cst_3 = arith.constant 1.000000e+00 : f32
    %5 = vector.broadcast %cst_3 : f32 to vector<8x512xf32>
    %6 = arith.addf %5, %4 : vector<8x512xf32>
    %7 = arith.divf %5, %6 : vector<8x512xf32>
    %c0_4 = arith.constant 0 : index
    %c0_5 = arith.constant 0 : index
    %8 = vector.load %arg3[%c0_4, %c0_5] : memref<8x512xf32, #tpu.memory_space<vmem>>, vector<8x512xf32>
    %9 = arith.mulf %7, %8 : vector<8x512xf32>
    %c0_6 = arith.constant 0 : index
    %c0_7 = arith.constant 0 : index
    %10 = vector.load %arg6[%c0_6, %c0_7] : memref<8x512xf32, #tpu.memory_space<vmem>>, vector<8x512xf32>
    tpu.vector_store %arg6[%c0_6, %c0_7], %9 {strides = array<i32>} : memref<8x512xf32, #tpu.memory_space<vmem>>, vector<8x512xf32>,
    %c0_8 = arith.constant 0 : index
    %c0_9 = arith.constant 0 : index
    %11 = vector.load %arg4[%c0_8, %c0_9] : memref<8x1xf32, #tpu.memory_space<vmem>>, vector<8x1xf32>
    %12 = vector.broadcast %11 : vector<8x1xf32> to vector<8x512xf32>
    %13 = arith.mulf %9, %12 : vector<8x512xf32>
    %c0_10 = arith.constant 0 : index
    %c0_11 = arith.constant 0 : index
    %14 = vector.load %arg5[%c0_10, %c0_11] : memref<8x1xf32, #tpu.memory_space<vmem>>, vector<8x1xf32>
    %15 = vector.broadcast %14 : vector<8x1xf32> to vector<8x512xf32>
    %16 = arith.addf %13, %15 : vector<8x512xf32>
    %c0_12 = arith.constant 0 : index
    %c0_13 = arith.constant 0 : index
    %17 = vector.load %arg7[%c0_12, %c0_13] : memref<8x512xf32, #tpu.memory_space<vmem>>, vector<8x512xf32>
    tpu.vector_store %arg7[%c0_12, %c0_13], %16 {strides = array<i32>} : memref<8x512xf32, #tpu.memory_space<vmem>>, vector<8x512xf32>,
    return
  }
  func.func @transform_0(%arg0: i32) -> (i32, i32) {
    %c0_i32 = arith.constant 0 : i32
    %c0_i32_0 = arith.constant 0 : i32
    return %c0_i32, %arg0 : i32, i32
  }
  func.func @transform_1(%arg0: i32) -> (i32, i32) {
    %c0_i32 = arith.constant 0 : i32
    %c0_i32_0 = arith.constant 0 : i32
    %c0_i32_1 = arith.constant 0 : i32
    return %c0_i32, %c0_i32_0 : i32, i32
  }
  func.func @transform_2(%arg0: i32) -> (i32, i32) {
    %c0_i32 = arith.constant 0 : i32
    %c0_i32_0 = arith.constant 0 : i32
    return %c0_i32, %arg0 : i32, i32
  }
  func.func @transform_3(%arg0: i32) -> (i32, i32) {
    %c0_i32 = arith.constant 0 : i32
    %c0_i32_0 = arith.constant 0 : i32
    %c0_i32_1 = arith.constant 0 : i32
    return %c0_i32, %c0_i32_0 : i32, i32
  }
  func.func @transform_4(%arg0: i32) -> (i32, i32) {
    %c0_i32 = arith.constant 0 : i32
    %c0_i32_0 = arith.constant 0 : i32
    %c0_i32_1 = arith.constant 0 : i32
    return %c0_i32, %c0_i32_0 : i32, i32
  }
  func.func @transform_5(%arg0: i32) -> (i32, i32) {
    %c0_i32 = arith.constant 0 : i32
    %c0_i32_0 = arith.constant 0 : i32
    return %c0_i32, %arg0 : i32, i32
  }
  func.func @transform_6(%arg0: i32) -> (i32, i32) {
    %c0_i32 = arith.constant 0 : i32
    %c0_i32_0 = arith.constant 0 : i32
    return %c0_i32, %arg0 : i32, i32
  }
}

module attributes {stable_mosaic.version = 11 : i64} {
  func.func @kernel(%arg0: i32, %arg1: memref<73x512xbf16, #tpu.memory_space<vmem>>, %arg2: memref<8x73xbf16, #tpu.memory_space<vmem>>, %arg3: memref<8x512xf32, #tpu.memory_space<vmem>>) attributes {dimension_semantics = [#tpu.dimension_semantics<parallel>], iteration_bounds = array<i64: 1>, scalar_prefetch = 0 : i64, scratch_operands = 0 : i64, tpu.core_type = #tpu.core_type<tc>, window_params = [{transform_indices = @transform_0, window_bounds = array<i64: 73, 512>}, {pipeline_mode = #tpu.pipeline_mode<synchronous>, transform_indices = @transform_1, window_bounds = array<i64: 8, 73>}, {transform_indices = @transform_2, window_bounds = array<i64: 8, 512>}]} {
    %c0 = arith.constant 0 : index
    %c0_0 = arith.constant 0 : index
    %0 = vector.load %arg2[%c0, %c0_0] : memref<8x73xbf16, #tpu.memory_space<vmem>>, vector<8x73xbf16>
    %c0_1 = arith.constant 0 : index
    %c0_2 = arith.constant 0 : index
    %1 = vector.load %arg1[%c0_1, %c0_2] : memref<73x512xbf16, #tpu.memory_space<vmem>>, vector<73x512xbf16>
    %cst = arith.constant dense<0.000000e+00> : vector<8x512xf32>
    %2 = tpu.matmul %0, %1, %cst {dimension_numbers = #tpu.dot_dimension_numbers<[1], [0], [0], [1], [0, 0, 1, 1], [], []>} : vector<8x73xbf16>, vector<73x512xbf16>, vector<8x512xf32> -> vector<8x512xf32>
    %cst_3 = arith.constant 0.000000e+00 : f32
    %3 = vector.broadcast %cst_3 : f32 to vector<8x512xf32>
    %4 = arith.maximumf %2, %3 : vector<8x512xf32>
    %c0_4 = arith.constant 0 : index
    %c0_5 = arith.constant 0 : index
    %5 = vector.load %arg3[%c0_4, %c0_5] : memref<8x512xf32, #tpu.memory_space<vmem>>, vector<8x512xf32>
    tpu.vector_store %arg3[%c0_4, %c0_5], %4 {strides = array<i32>} : memref<8x512xf32, #tpu.memory_space<vmem>>, vector<8x512xf32>,
    return
  }
  func.func @transform_0(%arg0: i32) -> (i32, i32) {
    %c0_i32 = arith.constant 0 : i32
    %c0_i32_0 = arith.constant 0 : i32
    return %c0_i32, %arg0 : i32, i32
  }
  func.func @transform_1(%arg0: i32) -> (i32, i32) {
    %c0_i32 = arith.constant 0 : i32
    %c0_i32_0 = arith.constant 0 : i32
    %c0_i32_1 = arith.constant 0 : i32
    return %c0_i32, %c0_i32_0 : i32, i32
  }
  func.func @transform_2(%arg0: i32) -> (i32, i32) {
    %c0_i32 = arith.constant 0 : i32
    %c0_i32_0 = arith.constant 0 : i32
    return %c0_i32, %arg0 : i32, i32
  }
}

module attributes {stable_mosaic.version = 11 : i64} {
  func.func @kernel(%arg0: i32, %arg1: memref<81x512xbf16, #tpu.memory_space<vmem>>, %arg2: memref<8x81xbf16, #tpu.memory_space<vmem>>, %arg3: memref<8x512xf32, #tpu.memory_space<vmem>>) attributes {dimension_semantics = [#tpu.dimension_semantics<parallel>], iteration_bounds = array<i64: 1>, scalar_prefetch = 0 : i64, scratch_operands = 0 : i64, tpu.core_type = #tpu.core_type<tc>, window_params = [{transform_indices = @transform_0, window_bounds = array<i64: 81, 512>}, {pipeline_mode = #tpu.pipeline_mode<synchronous>, transform_indices = @transform_1, window_bounds = array<i64: 8, 81>}, {transform_indices = @transform_2, window_bounds = array<i64: 8, 512>}]} {
    %c0 = arith.constant 0 : index
    %c0_0 = arith.constant 0 : index
    %0 = vector.load %arg2[%c0, %c0_0] : memref<8x81xbf16, #tpu.memory_space<vmem>>, vector<8x81xbf16>
    %c0_1 = arith.constant 0 : index
    %c0_2 = arith.constant 0 : index
    %1 = vector.load %arg1[%c0_1, %c0_2] : memref<81x512xbf16, #tpu.memory_space<vmem>>, vector<81x512xbf16>
    %cst = arith.constant dense<0.000000e+00> : vector<8x512xf32>
    %2 = tpu.matmul %0, %1, %cst {dimension_numbers = #tpu.dot_dimension_numbers<[1], [0], [0], [1], [0, 0, 1, 1], [], []>} : vector<8x81xbf16>, vector<81x512xbf16>, vector<8x512xf32> -> vector<8x512xf32>
    %c0_3 = arith.constant 0 : index
    %c0_4 = arith.constant 0 : index
    %3 = vector.load %arg3[%c0_3, %c0_4] : memref<8x512xf32, #tpu.memory_space<vmem>>, vector<8x512xf32>
    tpu.vector_store %arg3[%c0_3, %c0_4], %2 {strides = array<i32>} : memref<8x512xf32, #tpu.memory_space<vmem>>, vector<8x512xf32>,
    return
  }
  func.func @transform_0(%arg0: i32) -> (i32, i32) {
    %c0_i32 = arith.constant 0 : i32
    %c0_i32_0 = arith.constant 0 : i32
    return %c0_i32, %arg0 : i32, i32
  }
  func.func @transform_1(%arg0: i32) -> (i32, i32) {
    %c0_i32 = arith.constant 0 : i32
    %c0_i32_0 = arith.constant 0 : i32
    %c0_i32_1 = arith.constant 0 : i32
    return %c0_i32, %c0_i32_0 : i32, i32
  }
  func.func @transform_2(%arg0: i32) -> (i32, i32) {
    %c0_i32 = arith.constant 0 : i32
    %c0_i32_0 = arith.constant 0 : i32
    return %c0_i32, %arg0 : i32, i32
  }
}

module attributes {stable_mosaic.version = 11 : i64} {
  func.func @kernel(%arg0: i32, %arg1: memref<9x512xbf16, #tpu.memory_space<vmem>>, %arg2: memref<8x9xbf16, #tpu.memory_space<vmem>>, %arg3: memref<8x512xf32, #tpu.memory_space<vmem>>) attributes {dimension_semantics = [#tpu.dimension_semantics<parallel>], iteration_bounds = array<i64: 1>, scalar_prefetch = 0 : i64, scratch_operands = 0 : i64, tpu.core_type = #tpu.core_type<tc>, window_params = [{transform_indices = @transform_0, window_bounds = array<i64: 9, 512>}, {pipeline_mode = #tpu.pipeline_mode<synchronous>, transform_indices = @transform_1, window_bounds = array<i64: 8, 9>}, {transform_indices = @transform_2, window_bounds = array<i64: 8, 512>}]} {
    %c0 = arith.constant 0 : index
    %c0_0 = arith.constant 0 : index
    %0 = vector.load %arg2[%c0, %c0_0] : memref<8x9xbf16, #tpu.memory_space<vmem>>, vector<8x9xbf16>
    %c0_1 = arith.constant 0 : index
    %c0_2 = arith.constant 0 : index
    %1 = vector.load %arg1[%c0_1, %c0_2] : memref<9x512xbf16, #tpu.memory_space<vmem>>, vector<9x512xbf16>
    %cst = arith.constant dense<0.000000e+00> : vector<8x512xf32>
    %2 = tpu.matmul %0, %1, %cst {dimension_numbers = #tpu.dot_dimension_numbers<[1], [0], [0], [1], [0, 0, 1, 1], [], []>} : vector<8x9xbf16>, vector<9x512xbf16>, vector<8x512xf32> -> vector<8x512xf32>
    %c0_3 = arith.constant 0 : index
    %c0_4 = arith.constant 0 : index
    %3 = vector.load %arg3[%c0_3, %c0_4] : memref<8x512xf32, #tpu.memory_space<vmem>>, vector<8x512xf32>
    tpu.vector_store %arg3[%c0_3, %c0_4], %2 {strides = array<i32>} : memref<8x512xf32, #tpu.memory_space<vmem>>, vector<8x512xf32>,
    return
  }
  func.func @transform_0(%arg0: i32) -> (i32, i32) {
    %c0_i32 = arith.constant 0 : i32
    %c0_i32_0 = arith.constant 0 : i32
    return %c0_i32, %arg0 : i32, i32
  }
  func.func @transform_1(%arg0: i32) -> (i32, i32) {
    %c0_i32 = arith.constant 0 : i32
    %c0_i32_0 = arith.constant 0 : i32
    %c0_i32_1 = arith.constant 0 : i32
    return %c0_i32, %c0_i32_0 : i32, i32
  }
  func.func @transform_2(%arg0: i32) -> (i32, i32) {
    %c0_i32 = arith.constant 0 : i32
    %c0_i32_0 = arith.constant 0 : i32
    return %c0_i32, %arg0 : i32, i32
  }
}

module attributes {stable_mosaic.version = 11 : i64} {
  func.func @kernel(%arg0: i32, %arg1: memref<73x512xbf16, #tpu.memory_space<vmem>>, %arg2: memref<8x73xbf16, #tpu.memory_space<vmem>>, %arg3: memref<8x512xf32, #tpu.memory_space<vmem>>, %arg4: memref<8x512xf32, #tpu.memory_space<vmem>>) attributes {dimension_semantics = [#tpu.dimension_semantics<parallel>], iteration_bounds = array<i64: 1>, scalar_prefetch = 0 : i64, scratch_operands = 0 : i64, tpu.core_type = #tpu.core_type<tc>, window_params = [{transform_indices = @transform_0, window_bounds = array<i64: 73, 512>}, {pipeline_mode = #tpu.pipeline_mode<synchronous>, transform_indices = @transform_1, window_bounds = array<i64: 8, 73>}, {transform_indices = @transform_2, window_bounds = array<i64: 8, 512>}, {transform_indices = @transform_3, window_bounds = array<i64: 8, 512>}]} {
    %c0 = arith.constant 0 : index
    %c0_0 = arith.constant 0 : index
    %0 = vector.load %arg2[%c0, %c0_0] : memref<8x73xbf16, #tpu.memory_space<vmem>>, vector<8x73xbf16>
    %c0_1 = arith.constant 0 : index
    %c0_2 = arith.constant 0 : index
    %1 = vector.load %arg1[%c0_1, %c0_2] : memref<73x512xbf16, #tpu.memory_space<vmem>>, vector<73x512xbf16>
    %cst = arith.constant dense<0.000000e+00> : vector<8x512xf32>
    %2 = tpu.matmul %0, %1, %cst {dimension_numbers = #tpu.dot_dimension_numbers<[1], [0], [0], [1], [0, 0, 1, 1], [], []>} : vector<8x73xbf16>, vector<73x512xbf16>, vector<8x512xf32> -> vector<8x512xf32>
    %c0_3 = arith.constant 0 : index
    %c0_4 = arith.constant 0 : index
    %3 = vector.load %arg3[%c0_3, %c0_4] : memref<8x512xf32, #tpu.memory_space<vmem>>, vector<8x512xf32>
    %4 = arith.addf %2, %3 : vector<8x512xf32>
    %cst_5 = arith.constant 0.000000e+00 : f32
    %5 = vector.broadcast %cst_5 : f32 to vector<8x512xf32>
    %6 = arith.maximumf %4, %5 : vector<8x512xf32>
    %c0_6 = arith.constant 0 : index
    %c0_7 = arith.constant 0 : index
    %7 = vector.load %arg4[%c0_6, %c0_7] : memref<8x512xf32, #tpu.memory_space<vmem>>, vector<8x512xf32>
    tpu.vector_store %arg4[%c0_6, %c0_7], %6 {strides = array<i32>} : memref<8x512xf32, #tpu.memory_space<vmem>>, vector<8x512xf32>,
    return
  }
  func.func @transform_0(%arg0: i32) -> (i32, i32) {
    %c0_i32 = arith.constant 0 : i32
    %c0_i32_0 = arith.constant 0 : i32
    return %c0_i32, %arg0 : i32, i32
  }
  func.func @transform_1(%arg0: i32) -> (i32, i32) {
    %c0_i32 = arith.constant 0 : i32
    %c0_i32_0 = arith.constant 0 : i32
    %c0_i32_1 = arith.constant 0 : i32
    return %c0_i32, %c0_i32_0 : i32, i32
  }
  func.func @transform_2(%arg0: i32) -> (i32, i32) {
    %c0_i32 = arith.constant 0 : i32
    %c0_i32_0 = arith.constant 0 : i32
    return %c0_i32, %arg0 : i32, i32
  }
  func.func @transform_3(%arg0: i32) -> (i32, i32) {
    %c0_i32 = arith.constant 0 : i32
    %c0_i32_0 = arith.constant 0 : i32
    return %c0_i32, %arg0 : i32, i32
  }
}

module attributes {stable_mosaic.version = 11 : i64} {
  func.func @_fft_trio_kernel(%arg0: i32, %arg1: i32, %arg2: memref<1x73x512xbf16, #tpu.memory_space<vmem>>, %arg3: memref<1x8x73xbf16, #tpu.memory_space<vmem>>, %arg4: memref<8x512xf32, #tpu.memory_space<vmem>>) attributes {dimension_semantics = [#tpu.dimension_semantics<parallel>, #tpu.dimension_semantics<arbitrary>], iteration_bounds = array<i64: 1, 3>, scalar_prefetch = 0 : i64, scratch_operands = 0 : i64, tpu.core_type = #tpu.core_type<tc>, window_params = [{transform_indices = @transform_0, window_bounds = array<i64: 1, 73, 512>}, {transform_indices = @transform_1, window_bounds = array<i64: 1, 8, 73>}, {transform_indices = @transform_2, window_bounds = array<i64: 8, 512>}]} {
    %c0 = arith.constant 0 : index
    %c0_0 = arith.constant 0 : index
    %c0_1 = arith.constant 0 : index
    %0 = vector.load %arg3[%c0, %c0_0, %c0_1] : memref<1x8x73xbf16, #tpu.memory_space<vmem>>, vector<1x8x73xbf16>
    %1 = vector.shape_cast %0 : vector<1x8x73xbf16> to vector<8x73xbf16>
    %c0_2 = arith.constant 0 : index
    %c0_3 = arith.constant 0 : index
    %c0_4 = arith.constant 0 : index
    %2 = vector.load %arg2[%c0_2, %c0_3, %c0_4] : memref<1x73x512xbf16, #tpu.memory_space<vmem>>, vector<1x73x512xbf16>
    %3 = vector.shape_cast %2 : vector<1x73x512xbf16> to vector<73x512xbf16>
    %cst = arith.constant dense<0.000000e+00> : vector<8x512xf32>
    %4 = tpu.matmul %1, %3, %cst {dimension_numbers = #tpu.dot_dimension_numbers<[1], [0], [0], [1], [0, 0, 1, 1], [], []>} : vector<8x73xbf16>, vector<73x512xbf16>, vector<8x512xf32> -> vector<8x512xf32>
    %cst_5 = arith.constant 0.000000e+00 : f32
    %5 = vector.broadcast %cst_5 : f32 to vector<8x512xf32>
    %6 = arith.maximumf %4, %5 : vector<8x512xf32>
    %c0_i32 = arith.constant 0 : i32
    %7 = arith.cmpi eq, %arg1, %c0_i32 : i32
    %8 = arith.extui %7 : i1 to i32
    %c0_i32_6 = arith.constant 0 : i32
    %9 = arith.cmpi ne, %8, %c0_i32_6 : i32
    scf.if %9 {
      %c0_9 = arith.constant 0 : index
      %c0_10 = arith.constant 0 : index
      %13 = vector.load %arg4[%c0_9, %c0_10] : memref<8x512xf32, #tpu.memory_space<vmem>>, vector<8x512xf32>
      tpu.vector_store %arg4[%c0_9, %c0_10], %6 {strides = array<i32>} : memref<8x512xf32, #tpu.memory_space<vmem>>, vector<8x512xf32>,
    } else {
    }
    %c0_i32_7 = arith.constant 0 : i32
    %10 = arith.cmpi ne, %arg1, %c0_i32_7 : i32
    %11 = arith.extui %10 : i1 to i32
    %c0_i32_8 = arith.constant 0 : i32
    %12 = arith.cmpi ne, %11, %c0_i32_8 : i32
    scf.if %12 {
      %c0_9 = arith.constant 0 : index
      %c0_10 = arith.constant 0 : index
      %13 = vector.load %arg4[%c0_9, %c0_10] : memref<8x512xf32, #tpu.memory_space<vmem>>, vector<8x512xf32>
      %14 = arith.addf %13, %6 : vector<8x512xf32>
      %c0_11 = arith.constant 0 : index
      %c0_12 = arith.constant 0 : index
      %15 = vector.load %arg4[%c0_11, %c0_12] : memref<8x512xf32, #tpu.memory_space<vmem>>, vector<8x512xf32>
      tpu.vector_store %arg4[%c0_11, %c0_12], %14 {strides = array<i32>} : memref<8x512xf32, #tpu.memory_space<vmem>>, vector<8x512xf32>,
    } else {
    }
    return
  }
  func.func @transform_0(%arg0: i32, %arg1: i32) -> (i32, i32, i32) {
    %c0_i32 = arith.constant 0 : i32
    %c0_i32_0 = arith.constant 0 : i32
    return %arg1, %c0_i32, %arg0 : i32, i32, i32
  }
  func.func @transform_1(%arg0: i32, %arg1: i32) -> (i32, i32, i32) {
    %c0_i32 = arith.constant 0 : i32
    %c0_i32_0 = arith.constant 0 : i32
    %c0_i32_1 = arith.constant 0 : i32
    return %arg1, %c0_i32, %c0_i32_0 : i32, i32, i32
  }
  func.func @transform_2(%arg0: i32, %arg1: i32) -> (i32, i32) {
    %c0_i32 = arith.constant 0 : i32
    %c0_i32_0 = arith.constant 0 : i32
    return %c0_i32, %arg0 : i32, i32
  }
}

module attributes {stable_mosaic.version = 11 : i64} {
  func.func @kernel(%arg0: i32, %arg1: memref<33x512xbf16, #tpu.memory_space<vmem>>, %arg2: memref<8x33xbf16, #tpu.memory_space<vmem>>, %arg3: memref<8x512xf32, #tpu.memory_space<vmem>>) attributes {dimension_semantics = [#tpu.dimension_semantics<parallel>], iteration_bounds = array<i64: 1>, scalar_prefetch = 0 : i64, scratch_operands = 0 : i64, tpu.core_type = #tpu.core_type<tc>, window_params = [{transform_indices = @transform_0, window_bounds = array<i64: 33, 512>}, {pipeline_mode = #tpu.pipeline_mode<synchronous>, transform_indices = @transform_1, window_bounds = array<i64: 8, 33>}, {transform_indices = @transform_2, window_bounds = array<i64: 8, 512>}]} {
    %c0 = arith.constant 0 : index
    %c0_0 = arith.constant 0 : index
    %0 = vector.load %arg2[%c0, %c0_0] : memref<8x33xbf16, #tpu.memory_space<vmem>>, vector<8x33xbf16>
    %c0_1 = arith.constant 0 : index
    %c0_2 = arith.constant 0 : index
    %1 = vector.load %arg1[%c0_1, %c0_2] : memref<33x512xbf16, #tpu.memory_space<vmem>>, vector<33x512xbf16>
    %cst = arith.constant dense<0.000000e+00> : vector<8x512xf32>
    %2 = tpu.matmul %0, %1, %cst {dimension_numbers = #tpu.dot_dimension_numbers<[1], [0], [0], [1], [0, 0, 1, 1], [], []>} : vector<8x33xbf16>, vector<33x512xbf16>, vector<8x512xf32> -> vector<8x512xf32>
    %c0_3 = arith.constant 0 : index
    %c0_4 = arith.constant 0 : index
    %3 = vector.load %arg3[%c0_3, %c0_4] : memref<8x512xf32, #tpu.memory_space<vmem>>, vector<8x512xf32>
    tpu.vector_store %arg3[%c0_3, %c0_4], %2 {strides = array<i32>} : memref<8x512xf32, #tpu.memory_space<vmem>>, vector<8x512xf32>,
    return
  }
  func.func @transform_0(%arg0: i32) -> (i32, i32) {
    %c0_i32 = arith.constant 0 : i32
    %c0_i32_0 = arith.constant 0 : i32
    return %c0_i32, %arg0 : i32, i32
  }
  func.func @transform_1(%arg0: i32) -> (i32, i32) {
    %c0_i32 = arith.constant 0 : i32
    %c0_i32_0 = arith.constant 0 : i32
    %c0_i32_1 = arith.constant 0 : i32
    return %c0_i32, %c0_i32_0 : i32, i32
  }
  func.func @transform_2(%arg0: i32) -> (i32, i32) {
    %c0_i32 = arith.constant 0 : i32
    %c0_i32_0 = arith.constant 0 : i32
    return %c0_i32, %arg0 : i32, i32
  }
}

</mosaic_0001>

<bundles_post_ra>
// kernel: upper_module_forward.9
= control target key start
LH: loop header
LB: loop body
LE: loop exit
PB: predicated region body
PF: predicated region fallthrough
CT: control target
= control target key end

     0   :  { %vm262_vm0 = vcmask 1040384   ;;  %v707_v3 = vmov 0   ;;  %vm258_vm1 = vcmask 138240   ;;  %s1051_s0 = inlined_call_operand.vmem [shape: bf16[145,512], index: 0, kind: input, shape index: {}]   ;;  %s1052_s1 = inlined_call_operand.vmem [shape: bf16[8,145], index: 1, kind: input, shape index: {}]   ;;  %s1053_s3 = inlined_call_operand.vmem [shape: f32[8,1], index: 3, kind: input, shape index: {}]   ;;  %s1054_s4 = inlined_call_operand.vmem [shape: f32[8,1], index: 4, kind: input, shape index: {}]   ;;  %s1055_s2 = inlined_call_operand.vmem [shape: f32[8,512], index: 2, kind: input, shape index: {}]   ;;  %s1056_s5 = inlined_call_operand.vmem [shape: f32[8,512], index: 5, kind: output, shape index: {0}]   ;;  %s1057_s6 = inlined_call_operand.vmem [shape: f32[8,512], index: 6, kind: output, shape index: {1}]  }
   0x1   :  { %v615_v0 = vld [vmem:[%s1051_s0 + $0xe0] sm:$0xf]  ;;  %v683_v1 = vld [vmem:[%s1051_s0 + $0xec] sm:$0xf0]  ;;  %v681_v2 = vld [vmem:[%s1051_s0 + $0xe4] sm:$0xf]  ;;  %690 = vset.pattern.permute.xlu0 %v707_v3 }
   0x2   :  { %v616_v4 = vor.u32 %v683_v1, %v615_v0  ;;  %v617_v5 = vld [vmem:[%s1051_s0 + $0xf0] sm:$0xf0]  ;;  %v599_v6 = vld [vmem:[%s1051_s0 + $0xc0] sm:$0xf]  ;;  %v679_v7 = vld [vmem:[%s1051_s0 + $0xcc] sm:$0xf0] }
   0x3   :  { %v620_v8 = vor.u32 %v681_v2, %v617_v5  ;;  %v764_v9 = vld [vmem:[%s1051_s0 + $0x120] sm:$0x11]  ;;  %v600_v11 = vor.u32 %v679_v7, %v599_v6  ;;  %v601_v13 = vld [vmem:[%s1051_s0 + $0xd0] sm:$0xf0]  ;;  %v776_v14 = vld [vmem:[%s1051_s0 + $0x128] sm:$0x11] }
   0x4   :  { %v677_v10 = vld [vmem:[%s1051_s0 + $0xc4] sm:$0xf]  ;;  %277 = vmatpush.bf16.msra.mxu0 %v616_v4  ;;  %v178_v12 = vunpack.c.l.b16 %v764_v9  ;;  %v779_v15 = vsel %vm262_vm0, 65535, %v707_v3  ;;  %v180_v17 = vunpack.c.l.b16 %v776_v14  ;;  %v583_v18 = vld [vmem:[%s1051_s0 + $0xa0] sm:$0xf] }
   0x5   :  { %303 = vmatpush.bf16.msra.mxu2 %v620_v8  ;;  %v604_v16 = vor.u32 %v677_v10, %v601_v13  ;;  %v675_v19 = vld [vmem:[%s1051_s0 + $0xac] sm:$0xf0]  ;;  %v791_v20 = vld [vmem:[%s1052_s1] sm:$0xff]  ;;  %v585_v24 = vld [vmem:[%s1051_s0 + $0xb0] sm:$0xf0] }
   0x6   :  { %v218_v21 = vpack.c.b16 %v178_v12, %v178_v12  ;;  %v631_v22 = vld [vmem:[%s1051_s0 + $0x100] sm:$0xf]  ;;  %v673_v23 = vld [vmem:[%s1051_s0 + $0xa4] sm:$0xf]  ;;  %v220_v25 = vpack.c.b16 %v180_v17, %v180_v17  ;;  %v687_v26 = vld [vmem:[%s1051_s0 + $0x10c] sm:$0xf0]  ;;  %v584_v30 = vor.u32 %v675_v19, %v583_v18  ;;  %v64_v39 = vunpack.c.h.b16 %v791_v20 }
   0x7   :  { %v639_v27 = vld [vmem:[%s1051_s0 + $0x108] sm:$0xf]  ;;  %v688_v28 = vld [vmem:[%s1051_s0 + $0x114] sm:$0xf0]  ;;  %v682_v33 = vld [vmem:[%s1051_s0 + $0xec] sm:$0xf]  ;;  %v588_v35 = vor.u32 %v673_v23, %v585_v24  ;;  %v632_v40 = vor.u32 %v687_v26, %v631_v22  ;;  %v181_v18 = vunpack.c.h.b16 %v776_v14  ;;  %v179_v22 = vunpack.c.h.b16 %v764_v9 }
   0x8   :  { %278 = vmatpush.bf16.msra.mxu0 %v600_v11  ;;  %v266_v29 = vand.u32 %v779_v15, %v218_v21  ;;  %v623_v31 = vld [vmem:[%s1051_s0 + $0xe8] sm:$0xf]  ;;  %v684_v32 = vld [vmem:[%s1051_s0 + $0xf4] sm:$0xf0]  ;;  %v272_v34 = vand.u32 %v779_v15, %v220_v25  ;;  %v625_v36 = vld [vmem:[%s1051_s0 + $0xf8] sm:$0xf0]  ;;  %v640_v43 = vor.u32 %v688_v28, %v639_v27  ;;  %v856_v54 = vpack.c.b16 %v64_v39, %v64_v39 }
   0x9   :  { %304 = vmatpush.bf16.msra.mxu2 %v604_v16  ;;  %v567_v37 = vld [vmem:[%s1051_s0 + $0x80] sm:$0xf]  ;;  %v671_v38 = vld [vmem:[%s1051_s0 + $0x8c] sm:$0xf0]  ;;  %v669_v41 = vld [vmem:[%s1051_s0 + $0x84] sm:$0xf]  ;;  %v624_v44 = vor.u32 %v684_v32, %v623_v31  ;;  %v628_v45 = vor.u32 %v682_v33, %v625_v36  ;;  %v221_v31 = vpack.c.b16 %v181_v18, %v181_v18 }
   0xa   :  { %296 = vmatpush.bf16.msra.mxu1 %v266_v29  ;;  %v569_v42 = vld [vmem:[%s1051_s0 + $0x90] sm:$0xf0]  ;;  %348 = vmatpush.bf16.msra.mxu3 %v272_v34  ;;  %v568_v46 = vor.u32 %v671_v38, %v567_v37  ;;  %v607_v47 = vld [vmem:[%s1051_s0 + $0xc8] sm:$0xf]  ;;  %v680_v48 = vld [vmem:[%s1051_s0 + $0xd4] sm:$0xf0]  ;;  %v219_v34 = vpack.c.b16 %v179_v22, %v179_v22  ;;  %v63_v37 = vunpack.c.l.b16 %v791_v20 }
   0xb   :  { %v678_v49 = vld [vmem:[%s1051_s0 + $0xcc] sm:$0xf]  ;;  %v572_v50 = vor.u32 %v669_v41, %v569_v42  ;;  %v609_v51 = vld [vmem:[%s1051_s0 + $0xd8] sm:$0xf0]  ;;  %v551_v52 = vld [vmem:[%s1051_s0 + $0x60] sm:$0xf]  ;;  %v608_v57 = vor.u32 %v680_v48, %v607_v47 }
   0xc   :  { %279 = vmatpush.bf16.msra.mxu0 %v584_v30  ;;  %v667_v53 = vld [vmem:[%s1051_s0 + $0x6c] sm:$0xf0]  ;;  %v665_v55 = vld [vmem:[%s1051_s0 + $0x64] sm:$0xf]  ;;  %v553_v56 = vld [vmem:[%s1051_s0 + $0x70] sm:$0xf0]  ;;  %v612_v58 = vor.u32 %v678_v49, %v609_v51  ;;  %v65_v49 = vpack.c.b16 %v63_v37, %v63_v37 }
   0xd   :  { %305 = vmatpush.bf16.msra.mxu2 %v588_v35  ;;  %v552_v59 = vor.u32 %v667_v53, %v551_v52  ;;  %v591_v60 = vld [vmem:[%s1051_s0 + $0xa8] sm:$0xf]  ;;  %v676_v61 = vld [vmem:[%s1051_s0 + $0xb4] sm:$0xf0]  ;;  %v674_v62 = vld [vmem:[%s1051_s0 + $0xac] sm:$0xf]  ;;  %v556_v63 = vor.u32 %v665_v55, %v553_v56 }
   0xe   :  { %297 = vmatpush.bf16.msra.mxu1 %v632_v40  ;;  %349 = vmatpush.bf16.msra.mxu3 %v640_v43  ;;  %v593_v0 = vld [vmem:[%s1051_s0 + $0xb8] sm:$0xf0]  ;;  %v535_v1 = vld [vmem:[%s1051_s0 + $0x40] sm:$0xf]  ;;  %v663_v2 = vld [vmem:[%s1051_s0 + $0x4c] sm:$0xf0]  ;;  %v592_v5 = vor.u32 %v676_v61, %v591_v60 }
   0xf   :  { %v661_v3 = vld [vmem:[%s1051_s0 + $0x44] sm:$0xf]  ;;  %v537_v4 = vld [vmem:[%s1051_s0 + $0x50] sm:$0xf0]  ;;  %v596_v6 = vor.u32 %v674_v62, %v593_v0  ;;  %v536_v7 = vor.u32 %v663_v2, %v535_v1  ;;  %v575_v8 = vld [vmem:[%s1051_s0 + $0x88] sm:$0xf] }
  0x10   :  { %280 = vmatpush.bf16.msra.mxu0 %v568_v46  ;;  %v672_v10 = vld [vmem:[%s1051_s0 + $0x94] sm:$0xf0]  ;;  %v670_v11 = vld [vmem:[%s1051_s0 + $0x8c] sm:$0xf]  ;;  %v540_v12 = vor.u32 %v661_v3, %v537_v4  ;;  %v577_v13 = vld [vmem:[%s1051_s0 + $0x98] sm:$0xf0] }
  0x11   :  { %306 = vmatpush.bf16.msra.mxu2 %v572_v50  ;;  %645 = vmatmul.msk.bf16.vlgmr.msra.gmra.mxu1 %vm258_vm1, %v856_v54  ;;  %v519_v16 = vld [vmem:[%s1051_s0 + $0x20] sm:$0xf]  ;;  %v659_v17 = vld [vmem:[%s1051_s0 + $0x2c] sm:$0xf0]  ;;  %v657_v19 = vld [vmem:[%s1051_s0 + $0x24] sm:$0xf]  ;;  %v576_v23 = vor.u32 %v672_v10, %v575_v8  ;;  %v580_v24 = vor.u32 %v670_v11, %v577_v13 }
  0x12   :  { %329 = vmatpush.bf16.msrb.mxu1 %v624_v44  ;;  %355 = vmatpush.bf16.msrb.mxu3 %v628_v45  ;;  %v521_v21 = vld [vmem:[%s1051_s0 + $0x30] sm:$0xf0]  ;;  %v520_v25 = vor.u32 %v659_v17, %v519_v16  ;;  %v559_v14 = vld [vmem:[%s1051_s0 + $0x68] sm:$0xf]  ;;  %v668_v26 = vld [vmem:[%s1051_s0 + $0x74] sm:$0xf0]  ;;  %v275_v44 = vand.u32 %v779_v15, %v221_v31  ;;  %v269_v45 = vand.u32 %v779_v15, %v219_v34 }
  0x13   :  { %647 = vmatmul.msk.bf16.vlgmr.msra.gmra.mxu3 %vm258_vm1, %v856_v54  ;;  %v666_v27 = vld [vmem:[%s1051_s0 + $0x6c] sm:$0xf]  ;;  %v524_v9 = vor.u32 %v657_v19, %v521_v21  ;;  %v561_v28 = vld [vmem:[%s1051_s0 + $0x78] sm:$0xf0]  ;;  %v503_v29 = vld [vmem:[%s1051_s0] sm:$0xf]  ;;  %v560_v36 = vor.u32 %v668_v26, %v559_v14 }
  0x14   :  { %281 = vmatpush.bf16.msra.mxu0 %v552_v59  ;;  %v655_v30 = vld [vmem:[%s1051_s0 + $0xc] sm:$0xf0]  ;;  %v653_v32 = vld [vmem:[%s1051_s0 + $0x4] sm:$0xf]  ;;  %v505_v33 = vld [vmem:[%s1051_s0 + $0x10] sm:$0xf0]  ;;  %v564_v38 = vor.u32 %v666_v27, %v561_v28 }
  0x15   :  { %307 = vmatpush.bf16.msra.mxu2 %v556_v63  ;;  %v469_v35 = vld [vmem:[%s1053_s3] sm:$0xff]  ;;  %v504_v39 = vor.u32 %v655_v30, %v503_v29  ;;  %v543_v40 = vld [vmem:[%s1051_s0 + $0x48] sm:$0xf]  ;;  %v664_v41 = vld [vmem:[%s1051_s0 + $0x54] sm:$0xf0]  ;;  %v508_v42 = vor.u32 %v653_v32, %v505_v33 }
  0x16   :  { %330 = vmatpush.bf16.msrb.mxu1 %v608_v57  ;;  %356 = vmatpush.bf16.msrb.mxu3 %v612_v58  ;;  %v662_v43 = vld [vmem:[%s1051_s0 + $0x4c] sm:$0xf]  ;;  %v545_v20 = vld [vmem:[%s1051_s0 + $0x58] sm:$0xf0]  ;;  %v544_v48 = vor.u32 %v664_v41, %v543_v40  ;;  %v685_v50 = vld [vmem:[%s1051_s0 + $0x104] sm:$0xf] }
  0x17   :  { %472 = vperm.xlu0 %690, %v469_v35   ;;  %v686_v46 = vld [vmem:[%s1051_s0 + $0x10c] sm:$0xf]  ;;  %v641_v47 = vld [vmem:[%s1051_s0 + $0x118] sm:$0xf0]  ;;  %v633_v51 = vld [vmem:[%s1051_s0 + $0x110] sm:$0xf0]  ;;  %v548_v15 = vor.u32 %v662_v43, %v545_v20 }
  0x18   :  { %282 = vmatpush.bf16.msra.mxu0 %v536_v7  ;;  %v527_v52 = vld [vmem:[%s1051_s0 + $0x28] sm:$0xf]  ;;  %v660_v53 = vld [vmem:[%s1051_s0 + $0x34] sm:$0xf0]  ;;  %v658_v55 = vld [vmem:[%s1051_s0 + $0x2c] sm:$0xf]  ;;  %v644_v57 = vor.u32 %v686_v46, %v641_v47  ;;  %v636_v58 = vor.u32 %v685_v50, %v633_v51 }
  0x19   :  { %308 = vmatpush.bf16.msra.mxu2 %v540_v12  ;;  %v529_v56 = vld [vmem:[%s1051_s0 + $0x38] sm:$0xf0]  ;;  %v479_v59 = vld [vmem:[%s1054_s4] sm:$0xff]  ;;  %v528_v60 = vor.u32 %v660_v53, %v527_v52  ;;  %v511_v62 = vld [vmem:[%s1051_s0 + $0x8] sm:$0xf] }
  0x1a   :  { %331 = vmatpush.bf16.msrb.mxu1 %v592_v5  ;;  %357 = vmatpush.bf16.msrb.mxu3 %v596_v6  ;;  %v532_v61 = vor.u32 %v658_v55, %v529_v56  ;;  %v656_v63 = vld [vmem:[%s1051_s0 + $0x14] sm:$0xf0]  ;;  %v654_v0 = vld [vmem:[%s1051_s0 + $0xc] sm:$0xf]  ;;  %v513_v1 = vld [vmem:[%s1051_s0 + $0x18] sm:$0xf0] }
  0x1b   :  { %v512_v2 = vor.u32 %v656_v63, %v511_v62  ;;  %v516_v3 = vor.u32 %v654_v0, %v513_v1  ;;  %v457_v41 = vld [vmem:[%s1055_s2] sm:$0xff]  ;;  %v459_v62 = vld [vmem:[%s1055_s2 + $0x10] sm:$0xff] }
  0x1c   :  { %283 = vmatpush.bf16.msra.mxu0 %v520_v25 }
  0x1d   :  { %309 = vmatpush.bf16.msra.mxu2 %v524_v9 }
  0x1e   :  { %332 = vmatpush.bf16.msrb.mxu1 %v576_v23  ;;  %358 = vmatpush.bf16.msrb.mxu3 %v580_v24 }
  0x1f   :  { %482 = vperm.xlu0 %690, %v479_v59  }
  0x20   :  { %284 = vmatpush.bf16.msra.mxu0 %v504_v39 }
  0x21   :  { %310 = vmatpush.bf16.msra.mxu2 %v508_v42 }
  0x22   :  { %333 = vmatpush.bf16.msrb.mxu1 %v560_v36  ;;  %359 = vmatpush.bf16.msrb.mxu3 %v564_v38 }
  0x23   :  { %285 = vmatmul.bf16.vlgmr.msra.gmra.mxu0 %v65_v49 }
  0x24   :  { %374 = vmatpush.bf16.msrb.mxu0 %v275_v44  ;;  %311 = vmatmul.bf16.vlgmr.msra.gmra.mxu2 %v65_v49 }
  0x25   :  { %322 = vmatpush.bf16.msrb.mxu2 %v269_v45 }
  0x26   :  { %334 = vmatpush.bf16.msrb.mxu1 %v544_v48  ;;  %360 = vmatpush.bf16.msrb.mxu3 %v548_v15 }
  0x28   :  { %375 = vmatpush.bf16.msrb.mxu0 %v644_v57 }
  0x29   :  { %323 = vmatpush.bf16.msrb.mxu2 %v636_v58 }
  0x2a   :  { %335 = vmatpush.bf16.msrb.mxu1 %v528_v60  ;;  %361 = vmatpush.bf16.msrb.mxu3 %v532_v61 }
  0x2e   :  { %336 = vmatpush.bf16.msrb.mxu1 %v512_v2  ;;  %362 = vmatpush.bf16.msrb.mxu3 %v516_v3 }
  0x31   :  { %337 = vmatmul.bf16.vlgmr.msrb.gmra.mxu1 %v65_v49  ;;  %363 = vmatmul.bf16.vlgmr.msrb.gmra.mxu3 %v65_v49 }
  0x33   :  { %648 = vmatmul.msk.bf16.vlgmr.msrb.gmra.mxu0 %vm258_vm1, %v856_v54 }
  0x34   :  { %646 = vmatmul.msk.bf16.vlgmr.msrb.gmra.mxu2 %vm258_vm1, %v856_v54 }
  0x89   :  { %v1003_v28 = vpop.permute.xlu0 %472 }
  0x8e   :  { %v299_v4 = vpop.f32.mrf.mxu1 }
  0x91   :  { %v1008_v49 = vpop.permute.xlu0 %482 }
  0x96   :  { %v351_v5 = vpop.f32.mrf.mxu3  ;;  %v301_v6 = vpop.f32.mrf.mxu1 }
  0x9e   :  { %v353_v7 = vpop.f32.mrf.mxu3 }
  0xa0   :  { %v286_v8 = vpop.f32.mrf.mxu0 }
  0xa1   :  { %v300_v10 = vadd.f32 %v299_v4, %v286_v8 }
  0xa3   :  { %v649_v11 = vmul.f32 -1.442695, %v300_v10 }
  0xa5   :  { %691 = vpow2.f32 %v649_v11 }
  0xa7   :  { %v312_v12 = vpop.f32.mrf.mxu2 }
  0xa8   :  { %v288_v13 = vpop.f32.mrf.mxu0 }
  0xa9   :  { %v460_v13 = vld [vmem:[%s1055_s2 + $0x18] sm:$0xff] }
  0xab   :  { %v692_v16 = vpop.eup %691 }
  0xac   :  { %v393_v18 = vadd.f32 1.0, %v692_v16 }
  0xae   :  { %v338_v17 = vpop.f32.mrf.mxu1  ;;  %693 = vrcp.f32 %v393_v18  ;;  %vm402_vm2 = vweird.f32 %v393_v18  ;;  %v408_v34 = vand.u32 2147483648, %v393_v18  ;;  %v406_v36 = vand.u32 2147483647, %v393_v18 }
  0xaf   :  { %v352_v19 = vadd.f32 %v351_v5, %v338_v17  ;;  %v314_v22 = vpop.f32.mrf.mxu2 }
  0xb0   :  { %v377_v23 = vpop.f32.mrf.mxu0  ;;  %v409_v40 = vor.u32 1.1754944e-38, %v408_v34  ;;  %vm407_vm5 = vcmp.eq.f32.partialorder %v406_v36, 8.507059e+37 }
  0xb1   :  { %v651_v21 = vmul.f32 -1.442695, %v352_v19 }
  0xb3   :  { %695 = vpow2.f32 %v651_v21 }
  0xb4   :  { %v364_v54 = vpop.f32.mrf.mxu3  ;;  %v694_v14 = vpop.eup %693 }
  0xb5   :  { %v378_v24 = vadd.f32 %v377_v23, %v364_v54  ;;  %v398_v26 = vmul.f32 %v694_v14, %v393_v18  ;;  %vm403_vm3 = vweird.f32 %v694_v14 }
  0xb6   :  { %v340_v25 = vpop.f32.mrf.mxu1  ;;  %vm404_vm4 = vmor %vm402_vm2, %vm403_vm3 }
  0xb7   :  { %v652_v27 = vmul.f32 -1.442695, %v378_v24  ;;  %v399_v29 = vsub.f32 1.0, %v398_v26  ;;  %v325_v31 = vpop.f32.mrf.mxu2  ;;  %v458_v25 = vld [vmem:[%s1055_s2 + $0x8] sm:$0xff] }
  0xb8   :  { %v326_v32 = vadd.f32 %v325_v31, %v312_v12  ;;  %v379_v33 = vpop.f32.mrf.mxu0 }
  0xb9   :  { %v696_v9 = vpop.eup %695  ;;  %697 = vpow2.f32 %v652_v27  ;;  %v400_v35 = vmul.f32 %v694_v14, %v399_v29 }
  0xba   :  { %v395_v30 = vadd.f32 1.0, %v696_v9  ;;  %v650_v37 = vmul.f32 -1.442695, %v326_v32 }
  0xbb   :  { %v401_v39 = vadd.f32 %v694_v14, %v400_v35 }
  0xbc   :  { %699 = vrcp.f32 %v395_v30  ;;  %v366_v38 = vpop.f32.mrf.mxu3  ;;  %v438_v53 = vand.u32 2147483648, %v395_v30  ;;  %v436_v57 = vand.u32 2147483647, %v395_v30  ;;  %vm432_vm7 = vweird.f32 %v395_v30 }
  0xbd   :  { %701 = vpow2.f32 %v650_v37  ;;  %v405_v43 = vsel %vm404_vm4, %v694_v14, %v401_v39 }
  0xbe   :  { %v410_v44 = vsel %vm407_vm5, %v409_v40, %v405_v43  ;;  %v439_v61 = vor.u32 1.1754944e-38, %v438_v53  ;;  %vm437_vm9 = vcmp.eq.f32.partialorder %v436_v57, 8.507059e+37 }
  0xbf   :  { %v698_v42 = vpop.eup %697  ;;  %v327_v46 = vpop.f32.mrf.mxu2  ;;  %v461_v47 = vmul.f32 %v457_v41, %v410_v44 }
  0xc0   :  { %v396_v20 = vadd.f32 1.0, %v698_v42 }
  0xc1   :  { %465 = vst [vmem:[%s1056_s5] sm:$0xff] %v461_v47  ;;  %v475_v50 = vmul.f32 %v1003_v28, %v461_v47 }
  0xc2   :  { %v700_v45 = vpop.eup %699  ;;  %703 = vrcp.f32 %v396_v20  ;;  %v453_v2 = vand.u32 2147483648, %v396_v20  ;;  %vm447_vm10 = vweird.f32 %v396_v20  ;;  %v451_v6 = vand.u32 2147483647, %v396_v20 }
  0xc3   :  { %v428_v48 = vmul.f32 %v700_v45, %v395_v30  ;;  %v702_v51 = vpop.eup %701  ;;  %v485_v55 = vadd.f32 %v1008_v49, %v475_v50  ;;  %vm433_vm6 = vweird.f32 %v700_v45 }
  0xc4   :  { %v394_v52 = vadd.f32 1.0, %v702_v51  ;;  %vm434_vm8 = vmor %vm432_vm7, %vm433_vm6  ;;  %v454_v12 = vor.u32 1.1754944e-38, %v453_v2  ;;  %vm452_vm13 = vcmp.eq.f32.partialorder %v451_v6, 8.507059e+37 }
  0xc5   :  { %v429_v15 = vsub.f32 1.0, %v428_v48  ;;  %489 = vst [vmem:[%s1057_s6] sm:$0xff] %v485_v55 }
  0xc6   :  { %705 = vrcp.f32 %v394_v52  ;;  %v423_v17 = vand.u32 2147483648, %v394_v52  ;;  %v421_v21 = vand.u32 2147483647, %v394_v52  ;;  %vm417_vm15 = vweird.f32 %v394_v52 }
  0xc7   :  { %v430_v56 = vmul.f32 %v700_v45, %v429_v15 }
  0xc8   :  { %v704_v58 = vpop.eup %703  ;;  %v424_v24 = vor.u32 1.1754944e-38, %v423_v17  ;;  %vm422_vm1 = vcmp.eq.f32.partialorder %v421_v21, 8.507059e+37 }
  0xc9   :  { %v431_v59 = vadd.f32 %v700_v45, %v430_v56  ;;  %v443_v60 = vmul.f32 %v704_v58, %v396_v20  ;;  %vm448_vm11 = vweird.f32 %v704_v58 }
  0xca   :  { %vm449_vm12 = vmor %vm447_vm10, %vm448_vm11 }
  0xcb   :  { %v435_v63 = vsel %vm434_vm8, %v700_v45, %v431_v59  ;;  %v444_v0 = vsub.f32 1.0, %v443_v60 }
  0xcc   :  { %v440_v1 = vsel %vm437_vm9, %v439_v61, %v435_v63  ;;  %v706_v4 = vpop.eup %705 }
  0xcd   :  { %v463_v3 = vmul.f32 %v459_v62, %v440_v1  ;;  %v445_v5 = vmul.f32 %v704_v58, %v444_v0  ;;  %v413_v7 = vmul.f32 %v706_v4, %v394_v52  ;;  %vm418_vm14 = vweird.f32 %v706_v4 }
  0xce   :  { %vm419_vm0 = vmor %vm417_vm15, %vm418_vm14 }
  0xcf   :  { %467 = vst [vmem:[%s1056_s5 + $0x10] sm:$0xff] %v463_v3  ;;  %v477_v8 = vmul.f32 %v1003_v28, %v463_v3  ;;  %v446_v10 = vadd.f32 %v704_v58, %v445_v5  ;;  %v414_v11 = vsub.f32 1.0, %v413_v7 }
  0xd1   :  { %v487_v16 = vadd.f32 %v1008_v49, %v477_v8  ;;  %v450_v18 = vsel %vm449_vm12, %v704_v58, %v446_v10  ;;  %v415_v19 = vmul.f32 %v706_v4, %v414_v11 }
  0xd2   :  { %v455_v22 = vsel %vm452_vm13, %v454_v12, %v450_v18 }
  0xd3   :  { %491 = vst [vmem:[%s1057_s6 + $0x10] sm:$0xff] %v487_v16  ;;  %v464_v23 = vmul.f32 %v460_v13, %v455_v22  ;;  %v416_v54 = vadd.f32 %v706_v4, %v415_v19 }
  0xd5   :  { %468 = vst [vmem:[%s1056_s5 + $0x18] sm:$0xff] %v464_v23  ;;  %v478_v14 = vmul.f32 %v1003_v28, %v464_v23  ;;  %v420_v26 = vsel %vm419_vm0, %v706_v4, %v416_v54 }
  0xd6   :  { %v425_v27 = vsel %vm422_vm1, %v424_v24, %v420_v26 }
  0xd7   :  { %v488_v9 = vadd.f32 %v1008_v49, %v478_v14  ;;  %v462_v29 = vmul.f32 %v458_v25, %v425_v27 }
  0xd9   :  { %492 = vst [vmem:[%s1057_s6 + $0x18] sm:$0xff] %v488_v9  ;;  %v476_v30 = vmul.f32 %v1003_v28, %v462_v29 }
  0xda   :  { %466 = vst [vmem:[%s1056_s5 + $0x8] sm:$0xff] %v462_v29 }
  0xdb   :  { %v486_v31 = vadd.f32 %v1008_v49, %v476_v30 }
  0xdd   :  { %490 = vst [vmem:[%s1057_s6 + $0x8] sm:$0xff] %v486_v31 }

// kernel: upper_module_forward.14
= control target key start
LH: loop header
LB: loop body
LE: loop exit
PB: predicated region body
PF: predicated region fallthrough
CT: control target
= control target key end

     0   :  { %vm133_vm0 = vcmask 1043456   ;;  %vm134_vm1 = vcmask 1044480   ;;  %v318_v2 = vmov 65535   ;;  %vm129_vm2 = vcmask 596992   ;;  %s469_s0 = inlined_call_operand.vmem [shape: bf16[73,512], index: 0, kind: input, shape index: {}]   ;;  %s470_s1 = inlined_call_operand.vmem [shape: bf16[8,73], index: 1, kind: input, shape index: {}]   ;;  %s471_s2 = inlined_call_operand.vmem [shape: f32[8,512], index: 2, kind: output, shape index: {}]  }
   0x1   :  { %v279_v0 = vld [vmem:[%s469_s0 + $0x80] sm:$0xf]  ;;  %v315_v1 = vld [vmem:[%s469_s0 + $0x8c] sm:$0x10]  ;;  %v135_v3 = vsel %vm133_vm0, 4294967295, %v318_v2 }
   0x2   :  { %v280_v4 = vor.u32 %v315_v1, %v279_v0  ;;  %v136_v5 = vsel %vm134_vm1, %v135_v3, 0  ;;  %v313_v6 = vld [vmem:[%s469_s0 + $0x84] sm:$0xf]  ;;  %v281_v7 = vld [vmem:[%s469_s0 + $0x90] sm:$0x10] }
   0x3   :  { %v284_v8 = vor.u32 %v313_v6, %v281_v7  ;;  %v287_v9 = vld [vmem:[%s469_s0 + $0x88] sm:$0xf]  ;;  %v316_v10 = vld [vmem:[%s469_s0 + $0x94] sm:$0x10]  ;;  %v314_v11 = vld [vmem:[%s469_s0 + $0x8c] sm:$0xf] }
   0x4   :  { %v138_v12 = vand.u32 %v280_v4, %v136_v5  ;;  %v288_v13 = vor.u32 %v316_v10, %v287_v9  ;;  %v289_v14 = vld [vmem:[%s469_s0 + $0x98] sm:$0x10]  ;;  %v263_v15 = vld [vmem:[%s469_s0 + $0x60] sm:$0xf]  ;;  %v311_v16 = vld [vmem:[%s469_s0 + $0x6c] sm:$0xf0] }
   0x5   :  { %v141_v17 = vand.u32 %v284_v8, %v136_v5  ;;  %v292_v18 = vor.u32 %v314_v11, %v289_v14  ;;  %v309_v19 = vld [vmem:[%s469_s0 + $0x64] sm:$0xf]  ;;  %v265_v20 = vld [vmem:[%s469_s0 + $0x70] sm:$0xf0]  ;;  %v271_v21 = vld [vmem:[%s469_s0 + $0x68] sm:$0xf]  ;;  %v264_v23 = vor.u32 %v311_v16, %v263_v15 }
   0x6   :  { %152 = vmatpush.bf16.msra.mxu0 %v138_v12  ;;  %v144_v22 = vand.u32 %v288_v13, %v136_v5  ;;  %v312_v24 = vld [vmem:[%s469_s0 + $0x74] sm:$0xf0]  ;;  %v310_v25 = vld [vmem:[%s469_s0 + $0x6c] sm:$0xf]  ;;  %v273_v26 = vld [vmem:[%s469_s0 + $0x78] sm:$0xf0]  ;;  %v268_v28 = vor.u32 %v309_v19, %v265_v20 }
   0x7   :  { %165 = vmatpush.bf16.msra.mxu1 %v141_v17  ;;  %v147_v27 = vand.u32 %v292_v18, %v136_v5  ;;  %v247_v29 = vld [vmem:[%s469_s0 + $0x40] sm:$0xf]  ;;  %v307_v30 = vld [vmem:[%s469_s0 + $0x4c] sm:$0xf0]  ;;  %v272_v31 = vor.u32 %v312_v24, %v271_v21  ;;  %v305_v32 = vld [vmem:[%s469_s0 + $0x44] sm:$0xf]  ;;  %v276_v34 = vor.u32 %v310_v25, %v273_v26 }
   0x8   :  { %178 = vmatpush.bf16.msra.mxu2 %v144_v22  ;;  %v249_v33 = vld [vmem:[%s469_s0 + $0x50] sm:$0xf0]  ;;  %v255_v35 = vld [vmem:[%s469_s0 + $0x48] sm:$0xf]  ;;  %v308_v36 = vld [vmem:[%s469_s0 + $0x54] sm:$0xf0]  ;;  %v248_v37 = vor.u32 %v307_v30, %v247_v29 }
   0x9   :  { %191 = vmatpush.bf16.msra.mxu3 %v147_v27  ;;  %v306_v38 = vld [vmem:[%s469_s0 + $0x4c] sm:$0xf]  ;;  %v257_v39 = vld [vmem:[%s469_s0 + $0x58] sm:$0xf0]  ;;  %v252_v40 = vor.u32 %v305_v32, %v249_v33  ;;  %v231_v41 = vld [vmem:[%s469_s0 + $0x20] sm:$0xf]  ;;  %v256_v43 = vor.u32 %v308_v36, %v255_v35 }
   0xa   :  { %153 = vmatpush.bf16.msra.mxu0 %v264_v23  ;;  %v303_v42 = vld [vmem:[%s469_s0 + $0x2c] sm:$0xf0]  ;;  %v301_v44 = vld [vmem:[%s469_s0 + $0x24] sm:$0xf]  ;;  %v233_v45 = vld [vmem:[%s469_s0 + $0x30] sm:$0xf0]  ;;  %v260_v46 = vor.u32 %v306_v38, %v257_v39 }
   0xb   :  { %166 = vmatpush.bf16.msra.mxu1 %v268_v28  ;;  %v239_v47 = vld [vmem:[%s469_s0 + $0x28] sm:$0xf]  ;;  %v304_v48 = vld [vmem:[%s469_s0 + $0x34] sm:$0xf0]  ;;  %v232_v49 = vor.u32 %v303_v42, %v231_v41  ;;  %v302_v50 = vld [vmem:[%s469_s0 + $0x2c] sm:$0xf]  ;;  %v236_v52 = vor.u32 %v301_v44, %v233_v45 }
   0xc   :  { %179 = vmatpush.bf16.msra.mxu2 %v272_v31  ;;  %v241_v51 = vld [vmem:[%s469_s0 + $0x38] sm:$0xf0]  ;;  %v215_v53 = vld [vmem:[%s469_s0] sm:$0xf]  ;;  %v299_v54 = vld [vmem:[%s469_s0 + $0xc] sm:$0xf0]  ;;  %v240_v55 = vor.u32 %v304_v48, %v239_v47 }
   0xd   :  { %192 = vmatpush.bf16.msra.mxu3 %v276_v34  ;;  %v297_v56 = vld [vmem:[%s469_s0 + $0x4] sm:$0xf]  ;;  %v217_v57 = vld [vmem:[%s469_s0 + $0x10] sm:$0xf0]  ;;  %v244_v58 = vor.u32 %v302_v50, %v241_v51  ;;  %v223_v59 = vld [vmem:[%s469_s0 + $0x8] sm:$0xf]  ;;  %v216_v61 = vor.u32 %v299_v54, %v215_v53 }
   0xe   :  { %154 = vmatpush.bf16.msra.mxu0 %v248_v37  ;;  %v300_v60 = vld [vmem:[%s469_s0 + $0x14] sm:$0xf0]  ;;  %v298_v62 = vld [vmem:[%s469_s0 + $0xc] sm:$0xf]  ;;  %v225_v63 = vld [vmem:[%s469_s0 + $0x18] sm:$0xf0]  ;;  %v220_v0 = vor.u32 %v297_v56, %v217_v57 }
   0xf   :  { %167 = vmatpush.bf16.msra.mxu1 %v252_v40  ;;  %v224_v1 = vor.u32 %v300_v60, %v223_v59  ;;  %v228_v2 = vor.u32 %v298_v62, %v225_v63  ;;  %v12_v3 = vld [vmem:[%s470_s1] sm:$0xf] }
  0x10   :  { %180 = vmatpush.bf16.msra.mxu2 %v256_v43 }
  0x11   :  { %193 = vmatpush.bf16.msra.mxu3 %v260_v46 }
  0x12   :  { %155 = vmatpush.bf16.msra.mxu0 %v232_v49 }
  0x13   :  { %168 = vmatpush.bf16.msra.mxu1 %v236_v52 }
  0x14   :  { %181 = vmatpush.bf16.msra.mxu2 %v240_v55 }
  0x15   :  { %194 = vmatpush.bf16.msra.mxu3 %v244_v58 }
  0x16   :  { %156 = vmatpush.bf16.msra.mxu0 %v216_v61 }
  0x17   :  { %169 = vmatpush.bf16.msra.mxu1 %v220_v0 }
  0x18   :  { %182 = vmatpush.bf16.msra.mxu2 %v224_v1 }
  0x19   :  { %195 = vmatpush.bf16.msra.mxu3 %v228_v2  ;;  %293 = vmatmul.msk.bf16.vlgmr.msra.gmra.mxu0 %vm129_vm2, %v12_v3 }
  0x1a   :  { %294 = vmatmul.msk.bf16.vlgmr.msra.gmra.mxu1 %vm129_vm2, %v12_v3 }
  0x1b   :  { %295 = vmatmul.msk.bf16.vlgmr.msra.gmra.mxu2 %vm129_vm2, %v12_v3 }
  0x1c   :  { %296 = vmatmul.msk.bf16.vlgmr.msra.gmra.mxu3 %vm129_vm2, %v12_v3 }
  0x96   :  { %v158_v4 = vpop.f32.mrf.mxu0 }
  0x97   :  { %v201_v5 = vmax.f32 %v158_v4, 0.0  ;;  %v171_v6 = vpop.f32.mrf.mxu1 }
  0x98   :  { %v202_v7 = vmax.f32 %v171_v6, 0.0 }
  0x99   :  { %205 = vst [vmem:[%s471_s2] sm:$0xff] %v201_v5 }
  0x9a   :  { %206 = vst [vmem:[%s471_s2 + $0x8] sm:$0xff] %v202_v7 }
  0x9e   :  { %v184_v8 = vpop.f32.mrf.mxu2  ;;  %v160_v9 = vpop.f32.mrf.mxu0 }
  0x9f   :  { %v203_v10 = vmax.f32 %v184_v8, 0.0  ;;  %v197_v11 = vpop.f32.mrf.mxu3  ;;  %v173_v12 = vpop.f32.mrf.mxu1 }
  0xa0   :  { %v204_v13 = vmax.f32 %v197_v11, 0.0 }
  0xa1   :  { %207 = vst [vmem:[%s471_s2 + $0x10] sm:$0xff] %v203_v10 }
  0xa2   :  { %208 = vst [vmem:[%s471_s2 + $0x18] sm:$0xff] %v204_v13 }
  0xa6   :  { %v186_v14 = vpop.f32.mrf.mxu2 }
  0xa7   :  { %v199_v15 = vpop.f32.mrf.mxu3 }

// kernel: upper_module_forward.15
= control target key start
LH: loop header
LB: loop body
LE: loop exit
PB: predicated region body
PF: predicated region fallthrough
CT: control target
= control target key end

     0   :  { %vm149_vm0 = vcmask 1040384   ;;  %v329_v6 = vmov 0   ;;  %vm145_vm1 = vcmask 662528   ;;  %s486_s0 = inlined_call_operand.vmem [shape: bf16[81,512], index: 0, kind: input, shape index: {}]   ;;  %s487_s1 = inlined_call_operand.vmem [shape: bf16[8,81], index: 1, kind: input, shape index: {}]   ;;  %s488_s2 = inlined_call_operand.vmem [shape: f32[8,512], index: 2, kind: output, shape index: {}]  }
   0x1   :  { %v33_v0 = vld [vmem:[%s486_s0 + $0xa0] sm:$0x11]  ;;  %v34_v1 = vld [vmem:[%s486_s0 + $0xa8] sm:$0x11]  ;;  %v151_v7 = vsel %vm149_vm0, 65535, %v329_v6 }
   0x2   :  { %v97_v2 = vunpack.c.l.b16 %v33_v0  ;;  %v98_v3 = vunpack.c.h.b16 %v33_v0  ;;  %v99_v4 = vunpack.c.l.b16 %v34_v1  ;;  %v100_v5 = vunpack.c.h.b16 %v34_v1  ;;  %v290_v12 = vld [vmem:[%s486_s0 + $0x80] sm:$0xf]  ;;  %v326_v13 = vld [vmem:[%s486_s0 + $0x8c] sm:$0xf0]  ;;  %v324_v14 = vld [vmem:[%s486_s0 + $0x84] sm:$0xf] }
   0x3   :  { %v292_v15 = vld [vmem:[%s486_s0 + $0x90] sm:$0xf0]  ;;  %v298_v16 = vld [vmem:[%s486_s0 + $0x88] sm:$0xf]  ;;  %v327_v21 = vld [vmem:[%s486_s0 + $0x94] sm:$0xf0]  ;;  %v291_v24 = vor.u32 %v326_v13, %v290_v12 }
   0x4   :  { %v121_v8 = vpack.c.b16 %v97_v2, %v97_v2  ;;  %v122_v9 = vpack.c.b16 %v98_v3, %v98_v3  ;;  %v123_v10 = vpack.c.b16 %v99_v4, %v99_v4  ;;  %v124_v11 = vpack.c.b16 %v100_v5, %v100_v5  ;;  %v325_v22 = vld [vmem:[%s486_s0 + $0x8c] sm:$0xf]  ;;  %v300_v23 = vld [vmem:[%s486_s0 + $0x98] sm:$0xf0]  ;;  %v274_v26 = vld [vmem:[%s486_s0 + $0x60] sm:$0xf] }
   0x5   :  { %v295_v25 = vor.u32 %v324_v14, %v292_v15  ;;  %v322_v27 = vld [vmem:[%s486_s0 + $0x6c] sm:$0xf0]  ;;  %v299_v28 = vor.u32 %v327_v21, %v298_v16  ;;  %v303_v29 = vor.u32 %v325_v22, %v300_v23  ;;  %v320_v30 = vld [vmem:[%s486_s0 + $0x64] sm:$0xf]  ;;  %v276_v31 = vld [vmem:[%s486_s0 + $0x70] sm:$0xf0] }
   0x6   :  { %v153_v17 = vand.u32 %v151_v7, %v121_v8  ;;  %v156_v18 = vand.u32 %v151_v7, %v122_v9  ;;  %v159_v19 = vand.u32 %v151_v7, %v123_v10  ;;  %v162_v20 = vand.u32 %v151_v7, %v124_v11  ;;  %v282_v32 = vld [vmem:[%s486_s0 + $0x68] sm:$0xf]  ;;  %v323_v33 = vld [vmem:[%s486_s0 + $0x74] sm:$0xf0]  ;;  %v321_v34 = vld [vmem:[%s486_s0 + $0x6c] sm:$0xf] }
   0x7   :  { %v284_v35 = vld [vmem:[%s486_s0 + $0x78] sm:$0xf0]  ;;  %v275_v36 = vor.u32 %v322_v27, %v274_v26  ;;  %v279_v37 = vor.u32 %v320_v30, %v276_v31  ;;  %v258_v38 = vld [vmem:[%s486_s0 + $0x40] sm:$0xf]  ;;  %v318_v39 = vld [vmem:[%s486_s0 + $0x4c] sm:$0xf0]  ;;  %v283_v40 = vor.u32 %v323_v33, %v282_v32 }
   0x8   :  { %166 = vmatpush.bf16.msra.mxu0 %v153_v17  ;;  %179 = vmatpush.bf16.msra.mxu1 %v156_v18  ;;  %v287_v41 = vor.u32 %v321_v34, %v284_v35  ;;  %v316_v42 = vld [vmem:[%s486_s0 + $0x44] sm:$0xf]  ;;  %v260_v43 = vld [vmem:[%s486_s0 + $0x50] sm:$0xf0]  ;;  %v266_v44 = vld [vmem:[%s486_s0 + $0x48] sm:$0xf]  ;;  %v259_v48 = vor.u32 %v318_v39, %v258_v38 }
   0x9   :  { %192 = vmatpush.bf16.msra.mxu2 %v159_v19  ;;  %205 = vmatpush.bf16.msra.mxu3 %v162_v20  ;;  %v319_v45 = vld [vmem:[%s486_s0 + $0x54] sm:$0xf0]  ;;  %v317_v46 = vld [vmem:[%s486_s0 + $0x4c] sm:$0xf]  ;;  %v268_v47 = vld [vmem:[%s486_s0 + $0x58] sm:$0xf0]  ;;  %v263_v49 = vor.u32 %v316_v42, %v260_v43 }
   0xa   :  { %v242_v50 = vld [vmem:[%s486_s0 + $0x20] sm:$0xf]  ;;  %v314_v51 = vld [vmem:[%s486_s0 + $0x2c] sm:$0xf0]  ;;  %v267_v52 = vor.u32 %v319_v45, %v266_v44  ;;  %v271_v53 = vor.u32 %v317_v46, %v268_v47  ;;  %v312_v54 = vld [vmem:[%s486_s0 + $0x24] sm:$0xf] }
   0xb   :  { %v244_v55 = vld [vmem:[%s486_s0 + $0x30] sm:$0xf0]  ;;  %v250_v56 = vld [vmem:[%s486_s0 + $0x28] sm:$0xf]  ;;  %v315_v57 = vld [vmem:[%s486_s0 + $0x34] sm:$0xf0]  ;;  %v243_v60 = vor.u32 %v314_v51, %v242_v50 }
   0xc   :  { %167 = vmatpush.bf16.msra.mxu0 %v291_v24  ;;  %180 = vmatpush.bf16.msra.mxu1 %v295_v25  ;;  %v313_v58 = vld [vmem:[%s486_s0 + $0x2c] sm:$0xf]  ;;  %v252_v59 = vld [vmem:[%s486_s0 + $0x38] sm:$0xf0]  ;;  %v247_v61 = vor.u32 %v312_v54, %v244_v55  ;;  %v226_v62 = vld [vmem:[%s486_s0] sm:$0xf]  ;;  %v251_v0 = vor.u32 %v315_v57, %v250_v56 }
   0xd   :  { %193 = vmatpush.bf16.msra.mxu2 %v299_v28  ;;  %206 = vmatpush.bf16.msra.mxu3 %v303_v29  ;;  %v310_v63 = vld [vmem:[%s486_s0 + $0xc] sm:$0xf0]  ;;  %v255_v1 = vor.u32 %v313_v58, %v252_v59  ;;  %v308_v2 = vld [vmem:[%s486_s0 + $0x4] sm:$0xf]  ;;  %v228_v3 = vld [vmem:[%s486_s0 + $0x10] sm:$0xf0] }
   0xe   :  { %v234_v4 = vld [vmem:[%s486_s0 + $0x8] sm:$0xf]  ;;  %v311_v5 = vld [vmem:[%s486_s0 + $0x14] sm:$0xf0]  ;;  %v309_v6 = vld [vmem:[%s486_s0 + $0xc] sm:$0xf]  ;;  %v227_v8 = vor.u32 %v310_v63, %v226_v62  ;;  %v231_v9 = vor.u32 %v308_v2, %v228_v3 }
   0xf   :  { %v236_v7 = vld [vmem:[%s486_s0 + $0x18] sm:$0xf0]  ;;  %v235_v10 = vor.u32 %v311_v5, %v234_v4  ;;  %v12_v12 = vld [vmem:[%s487_s1] sm:$0xf] }
  0x10   :  { %168 = vmatpush.bf16.msra.mxu0 %v275_v36  ;;  %181 = vmatpush.bf16.msra.mxu1 %v279_v37  ;;  %v239_v11 = vor.u32 %v309_v6, %v236_v7 }
  0x11   :  { %194 = vmatpush.bf16.msra.mxu2 %v283_v40  ;;  %207 = vmatpush.bf16.msra.mxu3 %v287_v41 }
  0x14   :  { %169 = vmatpush.bf16.msra.mxu0 %v259_v48  ;;  %182 = vmatpush.bf16.msra.mxu1 %v263_v49 }
  0x15   :  { %195 = vmatpush.bf16.msra.mxu2 %v267_v52  ;;  %208 = vmatpush.bf16.msra.mxu3 %v271_v53 }
  0x18   :  { %170 = vmatpush.bf16.msra.mxu0 %v243_v60  ;;  %183 = vmatpush.bf16.msra.mxu1 %v247_v61 }
  0x19   :  { %196 = vmatpush.bf16.msra.mxu2 %v251_v0  ;;  %209 = vmatpush.bf16.msra.mxu3 %v255_v1 }
  0x1c   :  { %171 = vmatpush.bf16.msra.mxu0 %v227_v8  ;;  %184 = vmatpush.bf16.msra.mxu1 %v231_v9 }
  0x1d   :  { %197 = vmatpush.bf16.msra.mxu2 %v235_v10  ;;  %210 = vmatpush.bf16.msra.mxu3 %v239_v11 }
  0x1f   :  { %304 = vmatmul.msk.bf16.vlgmr.msra.gmra.mxu0 %vm145_vm1, %v12_v12  ;;  %305 = vmatmul.msk.bf16.vlgmr.msra.gmra.mxu1 %vm145_vm1, %v12_v12 }
  0x20   :  { %306 = vmatmul.msk.bf16.vlgmr.msra.gmra.mxu2 %vm145_vm1, %v12_v12  ;;  %307 = vmatmul.msk.bf16.vlgmr.msra.gmra.mxu3 %vm145_vm1, %v12_v12 }
  0x9c   :  { %v173_v13 = vpop.f32.mrf.mxu0  ;;  %v186_v14 = vpop.f32.mrf.mxu1 }
  0x9d   :  { %216 = vst [vmem:[%s488_s2] sm:$0xff] %v173_v13 }
  0x9e   :  { %217 = vst [vmem:[%s488_s2 + $0x8] sm:$0xff] %v186_v14 }
  0xa3   :  { %v199_v15 = vpop.f32.mrf.mxu2  ;;  %v212_v16 = vpop.f32.mrf.mxu3 }
  0xa4   :  { %218 = vst [vmem:[%s488_s2 + $0x10] sm:$0xff] %v199_v15  ;;  %v175_v17 = vpop.f32.mrf.mxu0  ;;  %v188_v18 = vpop.f32.mrf.mxu1 }
  0xa5   :  { %219 = vst [vmem:[%s488_s2 + $0x18] sm:$0xff] %v212_v16 }
  0xab   :  { %v201_v19 = vpop.f32.mrf.mxu2  ;;  %v214_v20 = vpop.f32.mrf.mxu3 }

// kernel: upper_module_forward.11
= control target key start
LH: loop header
LB: loop body
LE: loop exit
PB: predicated region body
PF: predicated region fallthrough
CT: control target
= control target key end

     0   :  { %vm37_vm0 = vcmask 1043456   ;;  %vm38_vm1 = vcmask 1044480   ;;  %v138_v2 = vmov 65535   ;;  %vm33_vm2 = vcmask 72704   ;;  %s193_s0 = inlined_call_operand.vmem [shape: bf16[9,512], index: 0, kind: input, shape index: {}]   ;;  %s194_s1 = inlined_call_operand.vmem [shape: bf16[8,9], index: 1, kind: input, shape index: {}]   ;;  %s195_s2 = inlined_call_operand.vmem [shape: f32[8,512], index: 2, kind: output, shape index: {}]  }
   0x1   :  { %v115_v0 = vld [vmem:[%s193_s0] sm:$0xf]  ;;  %v135_v1 = vld [vmem:[%s193_s0 + $0xc] sm:$0x10]  ;;  %v39_v3 = vsel %vm37_vm0, 4294967295, %v138_v2 }
   0x2   :  { %v116_v4 = vor.u32 %v135_v1, %v115_v0  ;;  %v40_v5 = vsel %vm38_vm1, %v39_v3, 0  ;;  %v133_v6 = vld [vmem:[%s193_s0 + $0x4] sm:$0xf]  ;;  %v117_v7 = vld [vmem:[%s193_s0 + $0x10] sm:$0x10] }
   0x3   :  { %v120_v8 = vor.u32 %v133_v6, %v117_v7  ;;  %v123_v9 = vld [vmem:[%s193_s0 + $0x8] sm:$0xf]  ;;  %v136_v10 = vld [vmem:[%s193_s0 + $0x14] sm:$0x10]  ;;  %v134_v11 = vld [vmem:[%s193_s0 + $0xc] sm:$0xf] }
   0x4   :  { %v42_v12 = vand.u32 %v116_v4, %v40_v5  ;;  %v124_v13 = vor.u32 %v136_v10, %v123_v9  ;;  %v125_v14 = vld [vmem:[%s193_s0 + $0x18] sm:$0x10]  ;;  %v12_v18 = vld [vmem:[%s194_s1] sm:$0xf] }
   0x5   :  { %v45_v15 = vand.u32 %v120_v8, %v40_v5  ;;  %v128_v16 = vor.u32 %v134_v11, %v125_v14 }
   0x6   :  { %60 = vmatpush.bf16.msra.mxu0 %v42_v12  ;;  %v48_v17 = vand.u32 %v124_v13, %v40_v5 }
   0x7   :  { %73 = vmatpush.bf16.msra.mxu1 %v45_v15  ;;  %v51_v19 = vand.u32 %v128_v16, %v40_v5 }
   0x8   :  { %86 = vmatpush.bf16.msra.mxu2 %v48_v17 }
   0x9   :  { %99 = vmatpush.bf16.msra.mxu3 %v51_v19  ;;  %129 = vmatmul.msk.bf16.vlgmr.msra.gmra.mxu0 %vm33_vm2, %v12_v18 }
   0xa   :  { %130 = vmatmul.msk.bf16.vlgmr.msra.gmra.mxu1 %vm33_vm2, %v12_v18 }
   0xb   :  { %131 = vmatmul.msk.bf16.vlgmr.msra.gmra.mxu2 %vm33_vm2, %v12_v18 }
   0xc   :  { %132 = vmatmul.msk.bf16.vlgmr.msra.gmra.mxu3 %vm33_vm2, %v12_v18 }
  0x86   :  { %v62_v20 = vpop.f32.mrf.mxu0 }
  0x87   :  { %105 = vst [vmem:[%s195_s2] sm:$0xff] %v62_v20  ;;  %v75_v21 = vpop.f32.mrf.mxu1 }
  0x88   :  { %106 = vst [vmem:[%s195_s2 + $0x8] sm:$0xff] %v75_v21 }
  0x8e   :  { %v88_v22 = vpop.f32.mrf.mxu2  ;;  %v64_v23 = vpop.f32.mrf.mxu0 }
  0x8f   :  { %107 = vst [vmem:[%s195_s2 + $0x10] sm:$0xff] %v88_v22  ;;  %v101_v24 = vpop.f32.mrf.mxu3  ;;  %v77_v25 = vpop.f32.mrf.mxu1 }
  0x90   :  { %108 = vst [vmem:[%s195_s2 + $0x18] sm:$0xff] %v101_v24 }
  0x96   :  { %v90_v26 = vpop.f32.mrf.mxu2 }
  0x97   :  { %v103_v27 = vpop.f32.mrf.mxu3 }

// kernel: upper_module_forward.13
= control target key start
LH: loop header
LB: loop body
LE: loop exit
PB: predicated region body
PF: predicated region fallthrough
CT: control target
= control target key end

     0   :  { %vm140_vm0 = vcmask 1043456   ;;  %vm141_vm1 = vcmask 1044480   ;;  %v325_v2 = vmov 65535   ;;  %vm136_vm2 = vcmask 596992   ;;  %s493_s0 = inlined_call_operand.vmem [shape: bf16[73,512], index: 0, kind: input, shape index: {}]   ;;  %s494_s1 = inlined_call_operand.vmem [shape: bf16[8,73], index: 1, kind: input, shape index: {}]   ;;  %s495_s2 = inlined_call_operand.vmem [shape: f32[8,512], index: 2, kind: input, shape index: {}]   ;;  %s496_s3 = inlined_call_operand.vmem [shape: f32[8,512], index: 3, kind: output, shape index: {}]  }
   0x1   :  { %v286_v0 = vld [vmem:[%s493_s0 + $0x80] sm:$0xf]  ;;  %v322_v1 = vld [vmem:[%s493_s0 + $0x8c] sm:$0x10]  ;;  %v142_v3 = vsel %vm140_vm0, 4294967295, %v325_v2 }
   0x2   :  { %v287_v4 = vor.u32 %v322_v1, %v286_v0  ;;  %v143_v5 = vsel %vm141_vm1, %v142_v3, 0  ;;  %v320_v6 = vld [vmem:[%s493_s0 + $0x84] sm:$0xf]  ;;  %v288_v7 = vld [vmem:[%s493_s0 + $0x90] sm:$0x10] }
   0x3   :  { %v291_v8 = vor.u32 %v320_v6, %v288_v7  ;;  %v294_v9 = vld [vmem:[%s493_s0 + $0x88] sm:$0xf]  ;;  %v323_v10 = vld [vmem:[%s493_s0 + $0x94] sm:$0x10]  ;;  %v321_v11 = vld [vmem:[%s493_s0 + $0x8c] sm:$0xf] }
   0x4   :  { %v145_v12 = vand.u32 %v287_v4, %v143_v5  ;;  %v295_v13 = vor.u32 %v323_v10, %v294_v9  ;;  %v296_v14 = vld [vmem:[%s493_s0 + $0x98] sm:$0x10]  ;;  %v270_v15 = vld [vmem:[%s493_s0 + $0x60] sm:$0xf]  ;;  %v318_v16 = vld [vmem:[%s493_s0 + $0x6c] sm:$0xf0] }
   0x5   :  { %v148_v17 = vand.u32 %v291_v8, %v143_v5  ;;  %v299_v18 = vor.u32 %v321_v11, %v296_v14  ;;  %v316_v19 = vld [vmem:[%s493_s0 + $0x64] sm:$0xf]  ;;  %v272_v20 = vld [vmem:[%s493_s0 + $0x70] sm:$0xf0]  ;;  %v278_v21 = vld [vmem:[%s493_s0 + $0x68] sm:$0xf]  ;;  %v271_v23 = vor.u32 %v318_v16, %v270_v15 }
   0x6   :  { %159 = vmatpush.bf16.msra.mxu0 %v145_v12  ;;  %v151_v22 = vand.u32 %v295_v13, %v143_v5  ;;  %v319_v24 = vld [vmem:[%s493_s0 + $0x74] sm:$0xf0]  ;;  %v317_v25 = vld [vmem:[%s493_s0 + $0x6c] sm:$0xf]  ;;  %v280_v26 = vld [vmem:[%s493_s0 + $0x78] sm:$0xf0]  ;;  %v275_v28 = vor.u32 %v316_v19, %v272_v20 }
   0x7   :  { %172 = vmatpush.bf16.msra.mxu1 %v148_v17  ;;  %v154_v27 = vand.u32 %v299_v18, %v143_v5  ;;  %v254_v29 = vld [vmem:[%s493_s0 + $0x40] sm:$0xf]  ;;  %v314_v30 = vld [vmem:[%s493_s0 + $0x4c] sm:$0xf0]  ;;  %v279_v31 = vor.u32 %v319_v24, %v278_v21  ;;  %v312_v32 = vld [vmem:[%s493_s0 + $0x44] sm:$0xf]  ;;  %v283_v34 = vor.u32 %v317_v25, %v280_v26 }
   0x8   :  { %185 = vmatpush.bf16.msra.mxu2 %v151_v22  ;;  %v256_v33 = vld [vmem:[%s493_s0 + $0x50] sm:$0xf0]  ;;  %v262_v35 = vld [vmem:[%s493_s0 + $0x48] sm:$0xf]  ;;  %v315_v36 = vld [vmem:[%s493_s0 + $0x54] sm:$0xf0]  ;;  %v255_v37 = vor.u32 %v314_v30, %v254_v29 }
   0x9   :  { %198 = vmatpush.bf16.msra.mxu3 %v154_v27  ;;  %v313_v38 = vld [vmem:[%s493_s0 + $0x4c] sm:$0xf]  ;;  %v264_v39 = vld [vmem:[%s493_s0 + $0x58] sm:$0xf0]  ;;  %v259_v40 = vor.u32 %v312_v32, %v256_v33  ;;  %v238_v41 = vld [vmem:[%s493_s0 + $0x20] sm:$0xf]  ;;  %v263_v43 = vor.u32 %v315_v36, %v262_v35 }
   0xa   :  { %160 = vmatpush.bf16.msra.mxu0 %v271_v23  ;;  %v310_v42 = vld [vmem:[%s493_s0 + $0x2c] sm:$0xf0]  ;;  %v308_v44 = vld [vmem:[%s493_s0 + $0x24] sm:$0xf]  ;;  %v240_v45 = vld [vmem:[%s493_s0 + $0x30] sm:$0xf0]  ;;  %v267_v46 = vor.u32 %v313_v38, %v264_v39 }
   0xb   :  { %173 = vmatpush.bf16.msra.mxu1 %v275_v28  ;;  %v246_v47 = vld [vmem:[%s493_s0 + $0x28] sm:$0xf]  ;;  %v311_v48 = vld [vmem:[%s493_s0 + $0x34] sm:$0xf0]  ;;  %v239_v49 = vor.u32 %v310_v42, %v238_v41  ;;  %v309_v50 = vld [vmem:[%s493_s0 + $0x2c] sm:$0xf]  ;;  %v243_v52 = vor.u32 %v308_v44, %v240_v45 }
   0xc   :  { %186 = vmatpush.bf16.msra.mxu2 %v279_v31  ;;  %v248_v51 = vld [vmem:[%s493_s0 + $0x38] sm:$0xf0]  ;;  %v222_v53 = vld [vmem:[%s493_s0] sm:$0xf]  ;;  %v306_v54 = vld [vmem:[%s493_s0 + $0xc] sm:$0xf0]  ;;  %v247_v55 = vor.u32 %v311_v48, %v246_v47 }
   0xd   :  { %199 = vmatpush.bf16.msra.mxu3 %v283_v34  ;;  %v304_v56 = vld [vmem:[%s493_s0 + $0x4] sm:$0xf]  ;;  %v224_v57 = vld [vmem:[%s493_s0 + $0x10] sm:$0xf0]  ;;  %v251_v58 = vor.u32 %v309_v50, %v248_v51  ;;  %v230_v59 = vld [vmem:[%s493_s0 + $0x8] sm:$0xf]  ;;  %v223_v61 = vor.u32 %v306_v54, %v222_v53 }
   0xe   :  { %161 = vmatpush.bf16.msra.mxu0 %v255_v37  ;;  %v307_v60 = vld [vmem:[%s493_s0 + $0x14] sm:$0xf0]  ;;  %v305_v62 = vld [vmem:[%s493_s0 + $0xc] sm:$0xf]  ;;  %v232_v63 = vld [vmem:[%s493_s0 + $0x18] sm:$0xf0]  ;;  %v227_v0 = vor.u32 %v304_v56, %v224_v57 }
   0xf   :  { %174 = vmatpush.bf16.msra.mxu1 %v259_v40  ;;  %v231_v1 = vor.u32 %v307_v60, %v230_v59  ;;  %v235_v2 = vor.u32 %v305_v62, %v232_v63  ;;  %v15_v3 = vld [vmem:[%s494_s1] sm:$0xf]  ;;  %v37_v5 = vld [vmem:[%s495_s2 + $0x8] sm:$0xff]  ;;  %v38_v12 = vld [vmem:[%s495_s2 + $0x10] sm:$0xff] }
  0x10   :  { %187 = vmatpush.bf16.msra.mxu2 %v263_v43  ;;  %v36_v4 = vld [vmem:[%s495_s2] sm:$0xff]  ;;  %v39_v13 = vld [vmem:[%s495_s2 + $0x18] sm:$0xff] }
  0x11   :  { %200 = vmatpush.bf16.msra.mxu3 %v267_v46 }
  0x12   :  { %162 = vmatpush.bf16.msra.mxu0 %v239_v49 }
  0x13   :  { %175 = vmatpush.bf16.msra.mxu1 %v243_v52 }
  0x14   :  { %188 = vmatpush.bf16.msra.mxu2 %v247_v55 }
  0x15   :  { %201 = vmatpush.bf16.msra.mxu3 %v251_v58 }
  0x16   :  { %163 = vmatpush.bf16.msra.mxu0 %v223_v61 }
  0x17   :  { %176 = vmatpush.bf16.msra.mxu1 %v227_v0 }
  0x18   :  { %189 = vmatpush.bf16.msra.mxu2 %v231_v1 }
  0x19   :  { %202 = vmatpush.bf16.msra.mxu3 %v235_v2  ;;  %300 = vmatmul.msk.bf16.vlgmr.msra.gmra.mxu0 %vm136_vm2, %v15_v3 }
  0x1a   :  { %301 = vmatmul.msk.bf16.vlgmr.msra.gmra.mxu1 %vm136_vm2, %v15_v3 }
  0x1b   :  { %302 = vmatmul.msk.bf16.vlgmr.msra.gmra.mxu2 %vm136_vm2, %v15_v3 }
  0x1c   :  { %303 = vmatmul.msk.bf16.vlgmr.msra.gmra.mxu3 %vm136_vm2, %v15_v3 }
  0x96   :  { %v165_v6 = vpop.f32.mrf.mxu0 }
  0x97   :  { %v166_v7 = vadd.f32 %v165_v6, %v36_v4  ;;  %v178_v8 = vpop.f32.mrf.mxu1 }
  0x98   :  { %v179_v9 = vadd.f32 %v178_v8, %v37_v5 }
  0x99   :  { %v208_v10 = vmax.f32 %v166_v7, 0.0 }
  0x9a   :  { %v209_v11 = vmax.f32 %v179_v9, 0.0 }
  0x9b   :  { %212 = vst [vmem:[%s496_s3] sm:$0xff] %v208_v10 }
  0x9c   :  { %213 = vst [vmem:[%s496_s3 + $0x8] sm:$0xff] %v209_v11 }
  0x9e   :  { %v191_v14 = vpop.f32.mrf.mxu2  ;;  %v167_v15 = vpop.f32.mrf.mxu0 }
  0x9f   :  { %v192_v16 = vadd.f32 %v191_v14, %v38_v12  ;;  %v204_v17 = vpop.f32.mrf.mxu3  ;;  %v180_v18 = vpop.f32.mrf.mxu1 }
  0xa0   :  { %v205_v19 = vadd.f32 %v204_v17, %v39_v13 }
  0xa1   :  { %v210_v20 = vmax.f32 %v192_v16, 0.0 }
  0xa2   :  { %v211_v21 = vmax.f32 %v205_v19, 0.0 }
  0xa3   :  { %214 = vst [vmem:[%s496_s3 + $0x10] sm:$0xff] %v210_v20 }
  0xa4   :  { %215 = vst [vmem:[%s496_s3 + $0x18] sm:$0xff] %v211_v21 }
  0xa6   :  { %v193_v22 = vpop.f32.mrf.mxu2 }
  0xa7   :  { %v206_v23 = vpop.f32.mrf.mxu3 }

// kernel: upper_module_forward.10
= control target key start
LH: loop header
LB: loop body
LE: loop exit
PB: predicated region body
PF: predicated region fallthrough
CT: control target
= control target key end

     0   :  { %s670_s9 = smov 0   ;;  %s672_s10 = smov 0   ;;  %s791_s0 = inlined_call_operand.vmem [shape: bf16[3,73,512], index: 0, kind: input, shape index: {}]   ;;  %s792_s1 = inlined_call_operand.vmem [shape: bf16[3,8,73], index: 1, kind: input, shape index: {}]   ;;  %s793_s2 = inlined_call_operand.vmem [shape: f32[8,512], index: 2, kind: output, shape index: {}]  }
   0x1   :  { %s674_s11 = smov 0  }
   0x2 LB: > { %s21_s12 = sadd.s32 1, %s648_s10  ;;  %p491_p0 = scmp.ge.s32.totalorder %s652_s11, 1  ;;  %s652_s11 = sphi %s674_s11, %s12_s11   ;;  %s648_s10 = sphi %s672_s10, %s795_s10   ;;  %s644_s9 = sphi %s670_s9, %s794_s9  }
   0x3   : > { %p22_p1 = scmp.ge.s32.totalorder %s21_s12, 3  ;;  %p140_p2 = scmp.lt.s32.totalorder %s652_s11, 4 }
   0x5   : > { %s797_s12 = smov (%p22_p1, %s21_s12), 0  ;;  %p141_p3 = pnand %p491_p0, %p140_p2 }
   0x6   : > { %p171_p4 = scmp.lt.s32.totalorder (!%p141_p3), %s644_s9, 2  ;;  %p578_p5 = scmp.ne.s32.totalorder (!%p141_p3), %s644_s9, 0 }
   0x7   : > { %144 = sbr.rel (%p141_p3) target bundleno = 201 (0xc9), region = 28 }
   0xc   : > { %vm312_vm0 = vcmask 1043456   ;;  %s692_s13 = scalar_select %p171_p4, %s644_s9, 2  ;;  %vm313_vm1 = vcmask 1044480   ;;  %v654_v0 = vmov 65535   ;;  %vm308_vm2 = vcmask 596992  }
   0xd   : > { %v314_v1 = vsel %vm312_vm0, 4294967295, %v654_v0 }
   0xe   : > { %s604_s14 = smul.u32 160, %s692_s13  ;;  %v315_v2 = vsel %vm313_vm1, %v314_v1, 0  ;;  %s493_s18 = sshll.u32 %s692_s13, 2 }
   0xf   : > { %s183_s21 = scalar_lea.vmem %s792_s1, %s493_s18 }
  0x10   : > { %s698_s17 = scalar_lea.vmem %s791_s0, %s604_s14 }
  0x11   : > { %v560_v3 = vld [vmem:[%s698_s17 + $0x80] sm:$0xf]  ;;  %v602_v4 = vld [vmem:[%s698_s17 + $0x8c] sm:$0x10]  ;;  %v600_v5 = vld [vmem:[%s698_s17 + $0x84] sm:$0xf] }
  0x12   : > { %v561_v6 = vor.u32 %v602_v4, %v560_v3  ;;  %v562_v7 = vld [vmem:[%s698_s17 + $0x90] sm:$0x10]  ;;  %v568_v8 = vld [vmem:[%s698_s17 + $0x88] sm:$0xf]  ;;  %v603_v9 = vld [vmem:[%s698_s17 + $0x94] sm:$0x10] }
  0x13   : > { %v565_v10 = vor.u32 %v600_v5, %v562_v7  ;;  %v569_v11 = vor.u32 %v603_v9, %v568_v8  ;;  %v601_v12 = vld [vmem:[%s698_s17 + $0x8c] sm:$0xf]  ;;  %v570_v13 = vld [vmem:[%s698_s17 + $0x98] sm:$0x10]  ;;  %v544_v14 = vld [vmem:[%s698_s17 + $0x60] sm:$0xf] }
  0x14   : > { %v317_v15 = vand.u32 %v561_v6, %v315_v2  ;;  %v573_v16 = vor.u32 %v601_v12, %v570_v13  ;;  %v598_v17 = vld [vmem:[%s698_s17 + $0x6c] sm:$0xf0]  ;;  %v596_v18 = vld [vmem:[%s698_s17 + $0x64] sm:$0xf]  ;;  %v546_v19 = vld [vmem:[%s698_s17 + $0x70] sm:$0xf0] }
  0x15   : > { %v320_v20 = vand.u32 %v565_v10, %v315_v2  ;;  %v323_v21 = vand.u32 %v569_v11, %v315_v2  ;;  %v552_v22 = vld [vmem:[%s698_s17 + $0x68] sm:$0xf]  ;;  %v599_v23 = vld [vmem:[%s698_s17 + $0x74] sm:$0xf0]  ;;  %v597_v24 = vld [vmem:[%s698_s17 + $0x6c] sm:$0xf]  ;;  %v545_v26 = vor.u32 %v598_v17, %v544_v14  ;;  %v549_v28 = vor.u32 %v596_v18, %v546_v19 }
  0x16   : > { %331 = vmatpush.bf16.msra.mxu0 %v317_v15  ;;  %v326_v25 = vand.u32 %v573_v16, %v315_v2  ;;  %v554_v27 = vld [vmem:[%s698_s17 + $0x78] sm:$0xf0]  ;;  %v553_v29 = vor.u32 %v599_v23, %v552_v22  ;;  %v528_v30 = vld [vmem:[%s698_s17 + $0x40] sm:$0xf]  ;;  %v594_v31 = vld [vmem:[%s698_s17 + $0x4c] sm:$0xf0] }
  0x17   : > { %344 = vmatpush.bf16.msra.mxu1 %v320_v20  ;;  %357 = vmatpush.bf16.msra.mxu2 %v323_v21  ;;  %v592_v32 = vld [vmem:[%s698_s17 + $0x44] sm:$0xf]  ;;  %v557_v33 = vor.u32 %v597_v24, %v554_v27  ;;  %v530_v34 = vld [vmem:[%s698_s17 + $0x50] sm:$0xf0]  ;;  %v536_v35 = vld [vmem:[%s698_s17 + $0x48] sm:$0xf]  ;;  %v529_v39 = vor.u32 %v594_v31, %v528_v30 }
  0x18   : > { %370 = vmatpush.bf16.msra.mxu3 %v326_v25  ;;  %v595_v36 = vld [vmem:[%s698_s17 + $0x54] sm:$0xf0]  ;;  %v593_v37 = vld [vmem:[%s698_s17 + $0x4c] sm:$0xf]  ;;  %v538_v38 = vld [vmem:[%s698_s17 + $0x58] sm:$0xf0]  ;;  %v533_v40 = vor.u32 %v592_v32, %v530_v34 }
  0x19   : > { %v537_v41 = vor.u32 %v595_v36, %v536_v35  ;;  %v512_v42 = vld [vmem:[%s698_s17 + $0x20] sm:$0xf]  ;;  %v590_v43 = vld [vmem:[%s698_s17 + $0x2c] sm:$0xf0]  ;;  %v588_v44 = vld [vmem:[%s698_s17 + $0x24] sm:$0xf]  ;;  %v541_v45 = vor.u32 %v593_v37, %v538_v38 }
  0x1a   : > { %332 = vmatpush.bf16.msra.mxu0 %v545_v26  ;;  %v514_v46 = vld [vmem:[%s698_s17 + $0x30] sm:$0xf0]  ;;  %v520_v47 = vld [vmem:[%s698_s17 + $0x28] sm:$0xf]  ;;  %v591_v48 = vld [vmem:[%s698_s17 + $0x34] sm:$0xf0]  ;;  %v513_v51 = vor.u32 %v590_v43, %v512_v42 }
  0x1b   : > { %345 = vmatpush.bf16.msra.mxu1 %v549_v28  ;;  %358 = vmatpush.bf16.msra.mxu2 %v553_v29  ;;  %v589_v49 = vld [vmem:[%s698_s17 + $0x2c] sm:$0xf]  ;;  %v522_v50 = vld [vmem:[%s698_s17 + $0x38] sm:$0xf0]  ;;  %v517_v52 = vor.u32 %v588_v44, %v514_v46  ;;  %v521_v53 = vor.u32 %v591_v48, %v520_v47  ;;  %v496_v54 = vld [vmem:[%s698_s17] sm:$0xf] }
  0x1c   : > { %371 = vmatpush.bf16.msra.mxu3 %v557_v33  ;;  %v586_v55 = vld [vmem:[%s698_s17 + $0xc] sm:$0xf0]  ;;  %v584_v56 = vld [vmem:[%s698_s17 + $0x4] sm:$0xf]  ;;  %v525_v57 = vor.u32 %v589_v49, %v522_v50  ;;  %v498_v58 = vld [vmem:[%s698_s17 + $0x10] sm:$0xf0] }
  0x1d   : > { %v504_v59 = vld [vmem:[%s698_s17 + $0x8] sm:$0xf]  ;;  %v587_v60 = vld [vmem:[%s698_s17 + $0x14] sm:$0xf0]  ;;  %v585_v61 = vld [vmem:[%s698_s17 + $0xc] sm:$0xf]  ;;  %v497_v63 = vor.u32 %v586_v55, %v496_v54  ;;  %v501_v0 = vor.u32 %v584_v56, %v498_v58 }
  0x1e   : > { %333 = vmatpush.bf16.msra.mxu0 %v529_v39  ;;  %v506_v62 = vld [vmem:[%s698_s17 + $0x18] sm:$0xf0]  ;;  %v505_v1 = vor.u32 %v587_v60, %v504_v59  ;;  %v191_v3 = vld [vmem:[%s183_s21] sm:$0xf] }
  0x1f   : > { %346 = vmatpush.bf16.msra.mxu1 %v533_v40  ;;  %359 = vmatpush.bf16.msra.mxu2 %v537_v41  ;;  %v509_v2 = vor.u32 %v585_v61, %v506_v62 }
  0x20   : > { %372 = vmatpush.bf16.msra.mxu3 %v541_v45 }
  0x22   : > { %334 = vmatpush.bf16.msra.mxu0 %v513_v51 }
  0x23   : > { %347 = vmatpush.bf16.msra.mxu1 %v517_v52  ;;  %360 = vmatpush.bf16.msra.mxu2 %v521_v53 }
  0x24   : > { %373 = vmatpush.bf16.msra.mxu3 %v525_v57 }
  0x26   : > { %335 = vmatpush.bf16.msra.mxu0 %v497_v63 }
  0x27   : > { %348 = vmatpush.bf16.msra.mxu1 %v501_v0  ;;  %361 = vmatpush.bf16.msra.mxu2 %v505_v1 }
  0x28   : > { %374 = vmatpush.bf16.msra.mxu3 %v509_v2 }
  0x29   : > { %574 = vmatmul.msk.bf16.vlgmr.msra.gmra.mxu0 %vm308_vm2, %v191_v3 }
  0x2a   : > { %575 = vmatmul.msk.bf16.vlgmr.msra.gmra.mxu1 %vm308_vm2, %v191_v3  ;;  %576 = vmatmul.msk.bf16.vlgmr.msra.gmra.mxu2 %vm308_vm2, %v191_v3 }
  0x2b   : > { %577 = vmatmul.msk.bf16.vlgmr.msra.gmra.mxu3 %vm308_vm2, %v191_v3 }
  0xa6   : > { %v337_v4 = vpop.f32.mrf.mxu0 }
  0xa7   : > { %v380_v5 = vmax.f32 %v337_v4, 0.0  ;;  %v350_v6 = vpop.f32.mrf.mxu1 }
  0xa8   : > { %v381_v7 = vmax.f32 %v350_v6, 0.0 }
  0xad   : > { %v363_v8 = vpop.f32.mrf.mxu2 }
  0xae   : > { %v382_v9 = vmax.f32 %v363_v8, 0.0  ;;  %v376_v10 = vpop.f32.mrf.mxu3  ;;  %v339_v11 = vpop.f32.mrf.mxu0 }
  0xaf   : > { %v383_v12 = vmax.f32 %v376_v10, 0.0  ;;  %v352_v13 = vpop.f32.mrf.mxu1 }
  0xb2   : > { %387 = sbr.rel (%p578_p5) target bundleno = 187 (0xbb), region = 32 }
  0xb5   : > { %v365_v14 = vpop.f32.mrf.mxu2 }
  0xb6   : > { %v378_v15 = vpop.f32.mrf.mxu3 }
  0xb7   : > { %388 = vst [vmem:[%s793_s2] sm:$0xff] %v380_v5 }
  0xb8   : > { %389 = vst [vmem:[%s793_s2 + $0x8] sm:$0xff] %v381_v7 }
  0xb9   : > { %390 = vst [vmem:[%s793_s2 + $0x10] sm:$0xff] %v382_v9 }
  0xba   : > { %391 = vst [vmem:[%s793_s2 + $0x18] sm:$0xff] %v383_v12 }
  0xbb PF: > { %p579_p6 = scmp.eq.s32.totalorder %s644_s9, 0 }
  0xbd   : > { %395 = sbr.rel (%p579_p6) target bundleno = 201 (0xc9), region = 36 }
  0xc2   : > { %v396_v16 = vld [vmem:[%s793_s2] sm:$0xff]  ;;  %v397_v17 = vld [vmem:[%s793_s2 + $0x8] sm:$0xff]  ;;  %v398_v18 = vld [vmem:[%s793_s2 + $0x10] sm:$0xff] }
  0xc3   : > { %v400_v19 = vadd.f32 %v396_v16, %v380_v5  ;;  %v401_v20 = vadd.f32 %v397_v17, %v381_v7  ;;  %v402_v21 = vadd.f32 %v398_v18, %v382_v9  ;;  %v399_v22 = vld [vmem:[%s793_s2 + $0x18] sm:$0xff] }
  0xc4   : > { %v403_v23 = vadd.f32 %v399_v22, %v383_v12 }
  0xc5   : > { %404 = vst [vmem:[%s793_s2] sm:$0xff] %v400_v19 }
  0xc6   : > { %405 = vst [vmem:[%s793_s2 + $0x8] sm:$0xff] %v401_v20 }
  0xc7   : > { %406 = vst [vmem:[%s793_s2 + $0x10] sm:$0xff] %v402_v21 }
  0xc8   : > { %407 = vst [vmem:[%s793_s2 + $0x18] sm:$0xff] %v403_v23 }
  0xc9 PF: > { %s12_s11 = sadd.s32 1, %s652_s11   ;;  %s794_s9 = smov %s648_s10 }
  0xca   : > { %p9_p7 = scmp.ge.s32.totalorder %s12_s11, 5   ;;  %s795_s10 = smov %s797_s12 }
  0xcc   :  { %11 = sbr.rel (!%p9_p7) target bundleno = 2 (0x2), region = 69 }

// kernel: upper_module_forward.17
= control target key start
LH: loop header
LB: loop body
LE: loop exit
PB: predicated region body
PF: predicated region fallthrough
CT: control target
= control target key end

     0   :  { %vm77_vm0 = vcmask 1040384   ;;  %v197_v6 = vmov 0   ;;  %vm73_vm1 = vcmask 269312   ;;  %s282_s0 = inlined_call_operand.vmem [shape: bf16[33,512], index: 0, kind: input, shape index: {}]   ;;  %s283_s1 = inlined_call_operand.vmem [shape: bf16[8,33], index: 1, kind: input, shape index: {}]   ;;  %s284_s2 = inlined_call_operand.vmem [shape: f32[8,512], index: 2, kind: output, shape index: {}]  }
   0x1   :  { %v21_v0 = vld [vmem:[%s282_s0 + $0x40] sm:$0x11]  ;;  %v22_v1 = vld [vmem:[%s282_s0 + $0x48] sm:$0x11]  ;;  %v79_v7 = vsel %vm77_vm0, 65535, %v197_v6 }
   0x2   :  { %v49_v2 = vunpack.c.l.b16 %v21_v0  ;;  %v50_v3 = vunpack.c.h.b16 %v21_v0  ;;  %v51_v4 = vunpack.c.l.b16 %v22_v1  ;;  %v52_v5 = vunpack.c.h.b16 %v22_v1  ;;  %v170_v12 = vld [vmem:[%s282_s0 + $0x20] sm:$0xf]  ;;  %v194_v13 = vld [vmem:[%s282_s0 + $0x2c] sm:$0xf0]  ;;  %v192_v14 = vld [vmem:[%s282_s0 + $0x24] sm:$0xf] }
   0x3   :  { %v172_v15 = vld [vmem:[%s282_s0 + $0x30] sm:$0xf0]  ;;  %v178_v16 = vld [vmem:[%s282_s0 + $0x28] sm:$0xf]  ;;  %v195_v21 = vld [vmem:[%s282_s0 + $0x34] sm:$0xf0]  ;;  %v171_v24 = vor.u32 %v194_v13, %v170_v12 }
   0x4   :  { %v61_v8 = vpack.c.b16 %v49_v2, %v49_v2  ;;  %v62_v9 = vpack.c.b16 %v50_v3, %v50_v3  ;;  %v63_v10 = vpack.c.b16 %v51_v4, %v51_v4  ;;  %v64_v11 = vpack.c.b16 %v52_v5, %v52_v5  ;;  %v193_v22 = vld [vmem:[%s282_s0 + $0x2c] sm:$0xf]  ;;  %v180_v23 = vld [vmem:[%s282_s0 + $0x38] sm:$0xf0]  ;;  %v154_v26 = vld [vmem:[%s282_s0] sm:$0xf] }
   0x5   :  { %v175_v25 = vor.u32 %v192_v14, %v172_v15  ;;  %v190_v27 = vld [vmem:[%s282_s0 + $0xc] sm:$0xf0]  ;;  %v179_v28 = vor.u32 %v195_v21, %v178_v16  ;;  %v183_v29 = vor.u32 %v193_v22, %v180_v23  ;;  %v188_v30 = vld [vmem:[%s282_s0 + $0x4] sm:$0xf]  ;;  %v156_v31 = vld [vmem:[%s282_s0 + $0x10] sm:$0xf0] }
   0x6   :  { %v81_v17 = vand.u32 %v79_v7, %v61_v8  ;;  %v84_v18 = vand.u32 %v79_v7, %v62_v9  ;;  %v87_v19 = vand.u32 %v79_v7, %v63_v10  ;;  %v90_v20 = vand.u32 %v79_v7, %v64_v11  ;;  %v162_v32 = vld [vmem:[%s282_s0 + $0x8] sm:$0xf]  ;;  %v191_v33 = vld [vmem:[%s282_s0 + $0x14] sm:$0xf0]  ;;  %v189_v34 = vld [vmem:[%s282_s0 + $0xc] sm:$0xf] }
   0x7   :  { %v164_v35 = vld [vmem:[%s282_s0 + $0x18] sm:$0xf0]  ;;  %v155_v36 = vor.u32 %v190_v27, %v154_v26  ;;  %v159_v37 = vor.u32 %v188_v30, %v156_v31  ;;  %v163_v38 = vor.u32 %v191_v33, %v162_v32  ;;  %v12_v40 = vld [vmem:[%s283_s1] sm:$0xf] }
   0x8   :  { %97 = vmatpush.bf16.msra.mxu0 %v81_v17  ;;  %110 = vmatpush.bf16.msra.mxu1 %v84_v18  ;;  %v167_v39 = vor.u32 %v189_v34, %v164_v35 }
   0x9   :  { %123 = vmatpush.bf16.msra.mxu2 %v87_v19  ;;  %136 = vmatpush.bf16.msra.mxu3 %v90_v20 }
   0xc   :  { %98 = vmatpush.bf16.msra.mxu0 %v171_v24  ;;  %111 = vmatpush.bf16.msra.mxu1 %v175_v25 }
   0xd   :  { %124 = vmatpush.bf16.msra.mxu2 %v179_v28  ;;  %137 = vmatpush.bf16.msra.mxu3 %v183_v29 }
  0x10   :  { %99 = vmatpush.bf16.msra.mxu0 %v155_v36  ;;  %112 = vmatpush.bf16.msra.mxu1 %v159_v37 }
  0x11   :  { %125 = vmatpush.bf16.msra.mxu2 %v163_v38  ;;  %138 = vmatpush.bf16.msra.mxu3 %v167_v39 }
  0x13   :  { %184 = vmatmul.msk.bf16.vlgmr.msra.gmra.mxu0 %vm73_vm1, %v12_v40  ;;  %185 = vmatmul.msk.bf16.vlgmr.msra.gmra.mxu1 %vm73_vm1, %v12_v40 }
  0x14   :  { %186 = vmatmul.msk.bf16.vlgmr.msra.gmra.mxu2 %vm73_vm1, %v12_v40  ;;  %187 = vmatmul.msk.bf16.vlgmr.msra.gmra.mxu3 %vm73_vm1, %v12_v40 }
  0x90   :  { %v101_v41 = vpop.f32.mrf.mxu0  ;;  %v114_v42 = vpop.f32.mrf.mxu1 }
  0x91   :  { %144 = vst [vmem:[%s284_s2] sm:$0xff] %v101_v41 }
  0x92   :  { %145 = vst [vmem:[%s284_s2 + $0x8] sm:$0xff] %v114_v42 }
  0x97   :  { %v127_v43 = vpop.f32.mrf.mxu2  ;;  %v140_v44 = vpop.f32.mrf.mxu3 }
  0x98   :  { %146 = vst [vmem:[%s284_s2 + $0x10] sm:$0xff] %v127_v43  ;;  %v103_v45 = vpop.f32.mrf.mxu0  ;;  %v116_v46 = vpop.f32.mrf.mxu1 }
  0x99   :  { %147 = vst [vmem:[%s284_s2 + $0x18] sm:$0xff] %v140_v44 }
  0x9f   :  { %v129_v47 = vpop.f32.mrf.mxu2  ;;  %v142_v48 = vpop.f32.mrf.mxu3 }

</bundles_post_ra>
